<compile_context>
chip_gen: v7x
topology: tpu7x:2x2x1
jax: 0.10.0
libtpu: 0.0.40
codegen_flags: <defaults>
</compile_context>

<pallas_src>
import functools
import math

import jax
import jax.numpy as jnp
from jax.experimental import pallas as pl
from jax.experimental.pallas import tpu as pltpu

EPS = 1e-5
NEG_MASK = -1e30                    # finite causal-mask sentinel (no -inf NaN hazard)
VMEM_LIMIT = 48 * 1024 * 1024       # fits v7x (64 MiB phys), raises v5e 16 MiB default


def _layernorm(x, gamma, beta):
    x = x.astype(jnp.float32)
    mu = jnp.mean(x, axis=-1, keepdims=True)
    var = jnp.mean((x - mu) ** 2, axis=-1, keepdims=True)
    return (x - mu) * jax.lax.rsqrt(var + EPS) * gamma + beta


def _const_spec(shape):
    """BlockSpec for a weight that is fully resident and identical for every grid step."""
    zeros = (0,) * len(shape)
    return pl.BlockSpec(shape, lambda *_, z=zeros: z)


def _pick_batch_block(B, S):
    """Largest bb in {8,4,2,1} dividing B with (bb*S) sublane-legal; prefer >=2 grid
    steps so both v7x TensorCores get work."""
    candidates = [bb for bb in (8, 4, 2, 1)
                  if B % bb == 0 and ((bb * S) % 8 == 0 or bb == B)]
    if not candidates:
        return B
    for bb in candidates:
        if B // bb >= 2:
            return bb
    return candidates[-1]


# ----------------------------- fused layer kernel -----------------------------

def layer_kernel(x_ref, ln1_g, ln1_b, wqkv, bqkv, wo, bo,
                 ln2_g, ln2_b, w1, b1, w2, b2, *rest, n_head, bb, S):
    """One full CLIP transformer layer (pre-LN attention + residual, pre-LN QuickGELU
    MLP + residual) on a (bb*S, D) row block. If two extra LN params are passed,
    the model's final LayerNorm is fused in (used only for the last layer)."""
    attn_ref = rest[-1]                            # (bb*S, D) f32 VMEM scratch
    o_ref = rest[-2]
    has_final_ln = len(rest) == 4

    x = x_ref[...].astype(jnp.float32)             # (bb*S, D)
    D = x.shape[-1]
    dh = D // n_head

    # ---- attention block ----
    h = _layernorm(x, ln1_g[0], ln1_b[0])
    qkv = jnp.dot(h.astype(jnp.bfloat16), wqkv[...],
                  preferred_element_type=jnp.float32) + bqkv[0]
    q = qkv[:, :D] * jnp.float32(1.0 / math.sqrt(dh))
    k = qkv[:, D:2 * D]
    v = qkv[:, 2 * D:]

    qi = jax.lax.broadcasted_iota(jnp.int32, (S, S), 0)
    kj = jax.lax.broadcasted_iota(jnp.int32, (S, S), 1)
    causal = kj > qi                               # mask future keys

    for b in range(bb):                            # static unroll over batch elems
        rs = slice(b * S, (b + 1) * S)
        for hd in range(n_head):                   # static unroll over heads
            cs = slice(hd * dh, (hd + 1) * dh)
            qh = q[rs, cs].astype(jnp.bfloat16)
            kh = k[rs, cs].astype(jnp.bfloat16)
            vh = v[rs, cs].astype(jnp.bfloat16)
            # contract last axes of both operands -> no kh transpose materialized
            s = jax.lax.dot_general(qh, kh, (((1,), (1,)), ((), ())),
                                    preferred_element_type=jnp.float32)
            s = jnp.where(causal, NEG_MASK, s)
            m = jnp.max(s, axis=-1, keepdims=True)
            p = jnp.exp(s - m)
            p = p * pl.reciprocal(jnp.sum(p, axis=-1, keepdims=True), approx=True)
            # write PV result directly into the scratch lane-slice (no concat)
            attn_ref[rs, cs] = jnp.dot(p.astype(jnp.bfloat16), vh,
                                       preferred_element_type=jnp.float32)

    proj = jnp.dot(attn_ref[...].astype(jnp.bfloat16), wo[...],
                   preferred_element_type=jnp.float32) + bo[0]
    x = proj + x                                   # residual 1

    # ---- MLP block ----
    h = _layernorm(x, ln2_g[0], ln2_b[0])
    h = jnp.dot(h.astype(jnp.bfloat16), w1[...],
                preferred_element_type=jnp.float32) + b1[0]
    h = h * jax.nn.sigmoid(1.702 * h)              # QuickGELU
    h = jnp.dot(h.astype(jnp.bfloat16), w2[...],
                preferred_element_type=jnp.float32) + b2[0]
    y = h + x                                      # residual 2

    if has_final_ln:                               # fused final model LayerNorm
        y = _layernorm(y, rest[0][0], rest[1][0])
    o_ref[...] = y.astype(o_ref.dtype)


# ----------------------------- wrappers -----------------------------

def clip_embedding(tokens, tok_emb, pos_emb):
    """Token + positional embedding. Gather is left to XLA per perf review (a
    (B,S)-grid one-row Pallas gather is pure launch/DMA overhead at real size).
    Emits (B*S, D) bf16 so layer kernels consume sublane-dense row blocks."""
    B, S = tokens.shape
    D = tok_emb.shape[-1]
    x = jnp.take(tok_emb, tokens.reshape(-1), axis=0) + jnp.tile(pos_emb, (B, 1))
    return x.astype(jnp.bfloat16).reshape(B * S, D)


def clip_layer(x2, lp, *, n_head, S, bb, final_ln=None, out_dtype=jnp.bfloat16):
    """One fused transformer layer over flattened (B*S, D) activations."""
    M, D = x2.shape
    Mb = bb * S
    weights = [lp['ln1_g'], lp['ln1_b'], lp['wqkv'], lp['bqkv'], lp['wo'], lp['bo'],
               lp['ln2_g'], lp['ln2_b'], lp['w1'], lp['b1'], lp['w2'], lp['b2']]
    if final_ln is not None:
        weights += [final_ln[0], final_ln[1]]
    in_specs = ([pl.BlockSpec((Mb, D), lambda i: (i, 0))]
                + [_const_spec(w.shape) for w in weights])
    return pl.pallas_call(
        functools.partial(layer_kernel, n_head=n_head, bb=bb, S=S),
        out_shape=jax.ShapeDtypeStruct((M, D), out_dtype),
        grid=(M // Mb,),
        in_specs=in_specs,
        out_specs=pl.BlockSpec((Mb, D), lambda i: (i, 0)),
        scratch_shapes=[pltpu.VMEM((Mb, D), jnp.float32)],
        compiler_params=pltpu.CompilerParams(
            dimension_semantics=("parallel",),
            vmem_limit_bytes=VMEM_LIMIT),
    )(x2, *weights)


def clip_forward(tokens, prep, n_head):
    B, S = tokens.shape
    D = prep['tok_emb'].shape[-1]
    bb = _pick_batch_block(B, S)
    x = clip_embedding(tokens, prep['tok_emb'], prep['pos_emb'])
    n_layers = len(prep['layers'])
    for i, lp in enumerate(prep['layers']):
        last = i == n_layers - 1
        x = clip_layer(
            x, lp, n_head=n_head, S=S, bb=bb,
            final_ln=(prep['ln_g'], prep['ln_b']) if last else None,
            out_dtype=jnp.float32 if last else jnp.bfloat16)
    return x.reshape(B, S, D)


# ----------------------------- params -----------------------------

def init_params(key, n_vocab, n_embd, n_token, n_layers):
    D = n_embd
    k_tok, k_pos, k_lay, k_g, k_b = jax.random.split(key, 5)
    nrm = jax.random.normal
    params = {
        'tok_emb': 0.02 * nrm(k_tok, (n_vocab, D), jnp.float32),
        'pos_emb': 0.01 * nrm(k_pos, (n_token, D), jnp.float32),
        'ln_g': 1.0 + 0.05 * nrm(k_g, (1, D), jnp.float32),
        'ln_b': 0.05 * nrm(k_b, (1, D), jnp.float32),
        'layers': [],
    }
    for lk in jax.random.split(k_lay, n_layers):
        ks = jax.random.split(lk, 12)
        params['layers'].append({
            'ln1_g': 1.0 + 0.05 * nrm(ks[0], (1, D), jnp.float32),
            'ln1_b': 0.05 * nrm(ks[1], (1, D), jnp.float32),
            'wqkv': 0.02 * nrm(ks[2], (D, 3 * D), jnp.float32),
            'bqkv': 0.02 * nrm(ks[3], (1, 3 * D), jnp.float32),
            'wo': 0.02 * nrm(ks[4], (D, D), jnp.float32),
            'bo': 0.02 * nrm(ks[5], (1, D), jnp.float32),
            'ln2_g': 1.0 + 0.05 * nrm(ks[6], (1, D), jnp.float32),
            'ln2_b': 0.05 * nrm(ks[7], (1, D), jnp.float32),
            'w1': 0.02 * nrm(ks[8], (D, 4 * D), jnp.float32),
            'b1': 0.02 * nrm(ks[9], (1, 4 * D), jnp.float32),
            'w2': 0.02 * nrm(ks[10], (4 * D, D), jnp.float32),
            'b2': 0.02 * nrm(ks[11], (1, D), jnp.float32),
        })
    return params


def prepare_params(params):
    """Kernel-side parameter layout: bf16 weight matrices, f32 biases/LN params."""
    prep = {
        'tok_emb': params['tok_emb'],
        'pos_emb': params['pos_emb'],
        'ln_g': params['ln_g'],
        'ln_b': params['ln_b'],
        'layers': [],
    }
    for lp in params['layers']:
        prep['layers'].append({
            'ln1_g': lp['ln1_g'], 'ln1_b': lp['ln1_b'],
            'wqkv': lp['wqkv'].astype(jnp.bfloat16), 'bqkv': lp['bqkv'],
            'wo': lp['wo'].astype(jnp.bfloat16), 'bo': lp['bo'],
            'ln2_g': lp['ln2_g'], 'ln2_b': lp['ln2_b'],
            'w1': lp['w1'].astype(jnp.bfloat16), 'b1': lp['b1'],
            'w2': lp['w2'].astype(jnp.bfloat16), 'b2': lp['b2'],
        })
    return prep


# ----------------------------- reference -----------------------------

def reference_forward(tokens, params, n_head):
    """Plain-JAX f32 reference identical to the PyTorch forward semantics."""
    x = params['tok_emb'][tokens] + params['pos_emb'][None]
    B, S, D = x.shape
    dh = D // n_head
    for lp in params['layers']:
        r = x
        h = _layernorm(x, lp['ln1_g'][0], lp['ln1_b'][0])
        qkv = h @ lp['wqkv'] + lp['bqkv'][0]
        q, k, v = jnp.split(qkv, 3, axis=-1)
        q = q.reshape(B, S, n_head, dh).transpose(0, 2, 1, 3)
        k = k.reshape(B, S, n_head, dh).transpose(0, 2, 1, 3)
        v = v.reshape(B, S, n_head, dh).transpose(0, 2, 1, 3)
        scores = jnp.einsum('bhqd,bhkd->bhqk', q, k) / math.sqrt(dh)
        mask = jnp.triu(jnp.ones((S, S), bool), 1)
        scores = jnp.where(mask[None, None], -jnp.inf, scores)
        p = jax.nn.softmax(scores, axis=-1)
        attn = jnp.einsum('bhqk,bhkd->bhqd', p, v)
        attn = attn.transpose(0, 2, 1, 3).reshape(B, S, D)
        x = attn @ lp['wo'] + lp['bo'][0] + r
        r = x
        h = _layernorm(x, lp['ln2_g'][0], lp['ln2_b'][0])
        h = h @ lp['w1'] + lp['b1'][0]
        h = h * jax.nn.sigmoid(1.702 * h)
        h = h @ lp['w2'] + lp['b2'][0]
        x = h + r
    return _layernorm(x, params['ln_g'][0], params['ln_b'][0])


# ----------------------------- main -----------------------------

if __name__ == "__main__":
    # Small, structure-consistent config (scaled down from 49408 / 768 / 77 tokens /
    # 12 heads / 12 layers of the real CLIP text encoder).
    N_VOCAB, N_EMBD, N_TOKEN, N_HEAD, N_LAYERS, BATCH = 128, 32, 8, 4, 2, 2

    key = jax.random.PRNGKey(0)
    k_params, k_tok = jax.random.split(key)
    params = init_params(k_params, N_VOCAB, N_EMBD, N_TOKEN, N_LAYERS)
    tokens = jax.random.randint(k_tok, (BATCH, N_TOKEN), 0, N_VOCAB, dtype=jnp.int32)

    prep = prepare_params(params)
    fwd = jax.jit(functools.partial(clip_forward, n_head=N_HEAD))
    out = jax.block_until_ready(fwd(tokens, prep))
    assert out.shape == (BATCH, N_TOKEN, N_EMBD) and out.dtype == jnp.float32

    ref = reference_forward(tokens, params, N_HEAD)
    if not jnp.allclose(out, ref, atol=5e-2, rtol=5e-2):
        max_err = float(jnp.max(jnp.abs(out - ref)))
        raise AssertionError(f"Pallas output mismatch vs reference, max abs err = {max_err}")

    print("KERNEL_OK")
</pallas_src>

<mosaic_0001>
module attributes {stable_mosaic.version = 11 : i64} {
  func.func @layer_kernel(%arg0: i32, %arg1: memref<8x32xbf16, #tpu.memory_space<vmem>>, %arg2: memref<1x32xf32, #tpu.memory_space<vmem>>, %arg3: memref<1x32xf32, #tpu.memory_space<vmem>>, %arg4: memref<32x96xbf16, #tpu.memory_space<vmem>>, %arg5: memref<1x96xf32, #tpu.memory_space<vmem>>, %arg6: memref<32x32xbf16, #tpu.memory_space<vmem>>, %arg7: memref<1x32xf32, #tpu.memory_space<vmem>>, %arg8: memref<1x32xf32, #tpu.memory_space<vmem>>, %arg9: memref<1x32xf32, #tpu.memory_space<vmem>>, %arg10: memref<32x128xbf16, #tpu.memory_space<vmem>>, %arg11: memref<1x128xf32, #tpu.memory_space<vmem>>, %arg12: memref<128x32xbf16, #tpu.memory_space<vmem>>, %arg13: memref<1x32xf32, #tpu.memory_space<vmem>>, %arg14: memref<8x32xbf16, #tpu.memory_space<vmem>>, %arg15: memref<8x32xf32, #tpu.memory_space<vmem>>) attributes {dimension_semantics = [#tpu.dimension_semantics<parallel>], iteration_bounds = array<i64: 2>, scalar_prefetch = 0 : i64, scratch_operands = 1 : i64, tpu.core_type = #tpu.core_type<tc>, window_params = [{transform_indices = @transform_0, window_bounds = array<i64: 8, 32>}, {pipeline_mode = #tpu.pipeline_mode<synchronous>, transform_indices = @transform_1, window_bounds = array<i64: 1, 32>}, {pipeline_mode = #tpu.pipeline_mode<synchronous>, transform_indices = @transform_2, window_bounds = array<i64: 1, 32>}, {pipeline_mode = #tpu.pipeline_mode<synchronous>, transform_indices = @transform_3, window_bounds = array<i64: 32, 96>}, {pipeline_mode = #tpu.pipeline_mode<synchronous>, transform_indices = @transform_4, window_bounds = array<i64: 1, 96>}, {pipeline_mode = #tpu.pipeline_mode<synchronous>, transform_indices = @transform_5, window_bounds = array<i64: 32, 32>}, {pipeline_mode = #tpu.pipeline_mode<synchronous>, transform_indices = @transform_6, window_bounds = array<i64: 1, 32>}, {pipeline_mode = #tpu.pipeline_mode<synchronous>, transform_indices = @transform_7, window_bounds = array<i64: 1, 32>}, {pipeline_mode = #tpu.pipeline_mode<synchronous>, transform_indices = @transform_8, window_bounds = array<i64: 1, 32>}, {pipeline_mode = #tpu.pipeline_mode<synchronous>, transform_indices = @transform_9, window_bounds = array<i64: 32, 128>}, {pipeline_mode = #tpu.pipeline_mode<synchronous>, transform_indices = @transform_10, window_bounds = array<i64: 1, 128>}, {pipeline_mode = #tpu.pipeline_mode<synchronous>, transform_indices = @transform_11, window_bounds = array<i64: 128, 32>}, {pipeline_mode = #tpu.pipeline_mode<synchronous>, transform_indices = @transform_12, window_bounds = array<i64: 1, 32>}, {transform_indices = @transform_13, window_bounds = array<i64: 8, 32>}]} {
    %c0 = arith.constant 0 : index
    %c0_0 = arith.constant 0 : index
    %0 = vector.load %arg1[%c0, %c0_0] : memref<8x32xbf16, #tpu.memory_space<vmem>>, vector<8x32xbf16>
    %1 = arith.extf %0 : vector<8x32xbf16> to vector<8x32xf32>
    %c0_1 = arith.constant 0 : index
    %c0_2 = arith.constant 0 : index
    %2 = vector.load %arg2[%c0_1, %c0_2] : memref<1x32xf32, #tpu.memory_space<vmem>>, vector<1x32xf32>
    %3 = vector.shape_cast %2 : vector<1x32xf32> to vector<32xf32>
    %c0_3 = arith.constant 0 : index
    %c0_4 = arith.constant 0 : index
    %4 = vector.load %arg3[%c0_3, %c0_4] : memref<1x32xf32, #tpu.memory_space<vmem>>, vector<1x32xf32>
    %5 = vector.shape_cast %4 : vector<1x32xf32> to vector<32xf32>
    %cst = arith.constant dense<0.000000e+00> : vector<8xf32>
    %6 = vector.multi_reduction <add>, %1, %cst [1] : vector<8x32xf32> to vector<8xf32>
    %7 = vector.shape_cast %6 : vector<8xf32> to vector<8x1xf32>
    %cst_5 = arith.constant 3.200000e+01 : f32
    %8 = vector.broadcast %cst_5 : f32 to vector<8x1xf32>
    %9 = arith.divf %7, %8 : vector<8x1xf32>
    %10 = vector.broadcast %9 : vector<8x1xf32> to vector<8x32xf32>
    %11 = arith.subf %1, %10 : vector<8x32xf32>
    %12 = arith.mulf %11, %11 : vector<8x32xf32>
    %cst_6 = arith.constant dense<0.000000e+00> : vector<8xf32>
    %13 = vector.multi_reduction <add>, %12, %cst_6 [1] : vector<8x32xf32> to vector<8xf32>
    %14 = vector.shape_cast %13 : vector<8xf32> to vector<8x1xf32>
    %cst_7 = arith.constant 3.200000e+01 : f32
    %15 = vector.broadcast %cst_7 : f32 to vector<8x1xf32>
    %16 = arith.divf %14, %15 : vector<8x1xf32>
    %17 = vector.broadcast %9 : vector<8x1xf32> to vector<8x32xf32>
    %18 = arith.subf %1, %17 : vector<8x32xf32>
    %cst_8 = arith.constant 9.99999974E-6 : f32
    %19 = vector.broadcast %cst_8 : f32 to vector<8x1xf32>
    %20 = arith.addf %16, %19 : vector<8x1xf32>
    %21 = math.rsqrt %20 : vector<8x1xf32>
    %22 = vector.broadcast %21 : vector<8x1xf32> to vector<8x32xf32>
    %23 = arith.mulf %18, %22 : vector<8x32xf32>
    %24 = vector.shape_cast %3 : vector<32xf32> to vector<1x32xf32>
    %25 = vector.broadcast %24 : vector<1x32xf32> to vector<8x32xf32>
    %26 = arith.mulf %23, %25 : vector<8x32xf32>
    %27 = vector.shape_cast %5 : vector<32xf32> to vector<1x32xf32>
    %28 = vector.broadcast %27 : vector<1x32xf32> to vector<8x32xf32>
    %29 = arith.addf %26, %28 : vector<8x32xf32>
    %30 = arith.truncf %29 : vector<8x32xf32> to vector<8x32xbf16>
    %c0_9 = arith.constant 0 : index
    %c0_10 = arith.constant 0 : index
    %31 = vector.load %arg4[%c0_9, %c0_10] : memref<32x96xbf16, #tpu.memory_space<vmem>>, vector<32x96xbf16>
    %cst_11 = arith.constant dense<0.000000e+00> : vector<8x96xf32>
    %32 = tpu.matmul %30, %31, %cst_11 {dimension_numbers = #tpu.dot_dimension_numbers<[1], [0], [0], [1], [0, 0, 1, 1], [], []>} : vector<8x32xbf16>, vector<32x96xbf16>, vector<8x96xf32> -> vector<8x96xf32>
    %c0_12 = arith.constant 0 : index
    %c0_13 = arith.constant 0 : index
    %33 = vector.load %arg5[%c0_12, %c0_13] : memref<1x96xf32, #tpu.memory_space<vmem>>, vector<1x96xf32>
    %34 = vector.shape_cast %33 : vector<1x96xf32> to vector<96xf32>
    %35 = vector.shape_cast %34 : vector<96xf32> to vector<1x96xf32>
    %36 = vector.broadcast %35 : vector<1x96xf32> to vector<8x96xf32>
    %37 = arith.addf %32, %36 : vector<8x96xf32>
    %38 = vector.extract_strided_slice %37 {offsets = [0, 0], sizes = [8, 32], strides = [1, 1]} : vector<8x96xf32> to vector<8x32xf32>
    %cst_14 = arith.constant 0.353553385 : f32
    %39 = vector.broadcast %cst_14 : f32 to vector<8x32xf32>
    %40 = arith.mulf %38, %39 : vector<8x32xf32>
    %41 = vector.extract_strided_slice %37 {offsets = [0, 32], sizes = [8, 32], strides = [1, 1]} : vector<8x96xf32> to vector<8x32xf32>
    %42 = vector.extract_strided_slice %37 {offsets = [0, 64], sizes = [8, 32], strides = [1, 1]} : vector<8x96xf32> to vector<8x32xf32>
    %43 = tpu.iota {dimensions = array<i32: 0>} : vector<8x8xi32>
    %44 = tpu.iota {dimensions = array<i32: 1>} : vector<8x8xi32>
    %45 = arith.cmpi sgt, %44, %43 : vector<8x8xi32>
    %46 = vector.extract_strided_slice %40 {offsets = [0, 0], sizes = [8, 8], strides = [1, 1]} : vector<8x32xf32> to vector<8x8xf32>
    %47 = arith.truncf %46 : vector<8x8xf32> to vector<8x8xbf16>
    %48 = vector.extract_strided_slice %41 {offsets = [0, 0], sizes = [8, 8], strides = [1, 1]} : vector<8x32xf32> to vector<8x8xf32>
    %49 = arith.truncf %48 : vector<8x8xf32> to vector<8x8xbf16>
    %50 = vector.extract_strided_slice %42 {offsets = [0, 0], sizes = [8, 8], strides = [1, 1]} : vector<8x32xf32> to vector<8x8xf32>
    %51 = arith.truncf %50 : vector<8x8xf32> to vector<8x8xbf16>
    %cst_15 = arith.constant dense<0.000000e+00> : vector<8x8xf32>
    %52 = tpu.matmul %47, %49, %cst_15 {dimension_numbers = #tpu.dot_dimension_numbers<[1], [1], [0], [0], [0, 0, 1, 0], [], []>} : vector<8x8xbf16>, vector<8x8xbf16>, vector<8x8xf32> -> vector<8x8xf32>
    %cst_16 = arith.constant -1.000000e+30 : f32
    %53 = vector.broadcast %cst_16 : f32 to vector<8x8xf32>
    %54 = arith.select %45, %53, %52 : vector<8x8xi1>, vector<8x8xf32>
    %cst_17 = arith.constant dense<0xFF800000> : vector<8xf32>
    %55 = vector.multi_reduction <maximumf>, %54, %cst_17 [1] : vector<8x8xf32> to vector<8xf32>
    %56 = vector.shape_cast %55 : vector<8xf32> to vector<8x1xf32>
    %57 = vector.broadcast %56 : vector<8x1xf32> to vector<8x8xf32>
    %58 = arith.subf %54, %57 : vector<8x8xf32>
    %59 = math.exp %58 : vector<8x8xf32>
    %cst_18 = arith.constant dense<0.000000e+00> : vector<8xf32>
    %60 = vector.multi_reduction <add>, %59, %cst_18 [1] : vector<8x8xf32> to vector<8xf32>
    %61 = vector.shape_cast %60 : vector<8xf32> to vector<8x1xf32>
    %62 = tpu.reciprocal %61 {approx = true} : vector<8x1xf32> -> vector<8x1xf32>
    %63 = vector.broadcast %62 : vector<8x1xf32> to vector<8x8xf32>
    %64 = arith.mulf %59, %63 : vector<8x8xf32>
    %65 = arith.truncf %64 : vector<8x8xf32> to vector<8x8xbf16>
    %cst_19 = arith.constant dense<0.000000e+00> : vector<8x8xf32>
    %66 = tpu.matmul %65, %51, %cst_19 {dimension_numbers = #tpu.dot_dimension_numbers<[1], [0], [0], [1], [0, 0, 1, 1], [], []>} : vector<8x8xbf16>, vector<8x8xbf16>, vector<8x8xf32> -> vector<8x8xf32>
    %c0_20 = arith.constant 0 : index
    %c0_21 = arith.constant 0 : index
    %67 = vector.load %arg15[%c0_20, %c0_21] : memref<8x32xf32, #tpu.memory_space<vmem>>, vector<8x8xf32>
    tpu.vector_store %arg15[%c0_20, %c0_21], %66 {strides = array<i32>} : memref<8x32xf32, #tpu.memory_space<vmem>>, vector<8x8xf32>,
    %68 = vector.extract_strided_slice %40 {offsets = [0, 8], sizes = [8, 8], strides = [1, 1]} : vector<8x32xf32> to vector<8x8xf32>
    %69 = arith.truncf %68 : vector<8x8xf32> to vector<8x8xbf16>
    %70 = vector.extract_strided_slice %41 {offsets = [0, 8], sizes = [8, 8], strides = [1, 1]} : vector<8x32xf32> to vector<8x8xf32>
    %71 = arith.truncf %70 : vector<8x8xf32> to vector<8x8xbf16>
    %72 = vector.extract_strided_slice %42 {offsets = [0, 8], sizes = [8, 8], strides = [1, 1]} : vector<8x32xf32> to vector<8x8xf32>
    %73 = arith.truncf %72 : vector<8x8xf32> to vector<8x8xbf16>
    %cst_22 = arith.constant dense<0.000000e+00> : vector<8x8xf32>
    %74 = tpu.matmul %69, %71, %cst_22 {dimension_numbers = #tpu.dot_dimension_numbers<[1], [1], [0], [0], [0, 0, 1, 0], [], []>} : vector<8x8xbf16>, vector<8x8xbf16>, vector<8x8xf32> -> vector<8x8xf32>
    %cst_23 = arith.constant -1.000000e+30 : f32
    %75 = vector.broadcast %cst_23 : f32 to vector<8x8xf32>
    %76 = arith.select %45, %75, %74 : vector<8x8xi1>, vector<8x8xf32>
    %cst_24 = arith.constant dense<0xFF800000> : vector<8xf32>
    %77 = vector.multi_reduction <maximumf>, %76, %cst_24 [1] : vector<8x8xf32> to vector<8xf32>
    %78 = vector.shape_cast %77 : vector<8xf32> to vector<8x1xf32>
    %79 = vector.broadcast %78 : vector<8x1xf32> to vector<8x8xf32>
    %80 = arith.subf %76, %79 : vector<8x8xf32>
    %81 = math.exp %80 : vector<8x8xf32>
    %cst_25 = arith.constant dense<0.000000e+00> : vector<8xf32>
    %82 = vector.multi_reduction <add>, %81, %cst_25 [1] : vector<8x8xf32> to vector<8xf32>
    %83 = vector.shape_cast %82 : vector<8xf32> to vector<8x1xf32>
    %84 = tpu.reciprocal %83 {approx = true} : vector<8x1xf32> -> vector<8x1xf32>
    %85 = vector.broadcast %84 : vector<8x1xf32> to vector<8x8xf32>
    %86 = arith.mulf %81, %85 : vector<8x8xf32>
    %87 = arith.truncf %86 : vector<8x8xf32> to vector<8x8xbf16>
    %cst_26 = arith.constant dense<0.000000e+00> : vector<8x8xf32>
    %88 = tpu.matmul %87, %73, %cst_26 {dimension_numbers = #tpu.dot_dimension_numbers<[1], [0], [0], [1], [0, 0, 1, 1], [], []>} : vector<8x8xbf16>, vector<8x8xbf16>, vector<8x8xf32> -> vector<8x8xf32>
    %c0_27 = arith.constant 0 : index
    %c8 = arith.constant 8 : index
    %89 = vector.load %arg15[%c0_27, %c8] : memref<8x32xf32, #tpu.memory_space<vmem>>, vector<8x8xf32>
    tpu.vector_store %arg15[%c0_27, %c8], %88 {strides = array<i32>} : memref<8x32xf32, #tpu.memory_space<vmem>>, vector<8x8xf32>,
    %90 = vector.extract_strided_slice %40 {offsets = [0, 16], sizes = [8, 8], strides = [1, 1]} : vector<8x32xf32> to vector<8x8xf32>
    %91 = arith.truncf %90 : vector<8x8xf32> to vector<8x8xbf16>
    %92 = vector.extract_strided_slice %41 {offsets = [0, 16], sizes = [8, 8], strides = [1, 1]} : vector<8x32xf32> to vector<8x8xf32>
    %93 = arith.truncf %92 : vector<8x8xf32> to vector<8x8xbf16>
    %94 = vector.extract_strided_slice %42 {offsets = [0, 16], sizes = [8, 8], strides = [1, 1]} : vector<8x32xf32> to vector<8x8xf32>
    %95 = arith.truncf %94 : vector<8x8xf32> to vector<8x8xbf16>
    %cst_28 = arith.constant dense<0.000000e+00> : vector<8x8xf32>
    %96 = tpu.matmul %91, %93, %cst_28 {dimension_numbers = #tpu.dot_dimension_numbers<[1], [1], [0], [0], [0, 0, 1, 0], [], []>} : vector<8x8xbf16>, vector<8x8xbf16>, vector<8x8xf32> -> vector<8x8xf32>
    %cst_29 = arith.constant -1.000000e+30 : f32
    %97 = vector.broadcast %cst_29 : f32 to vector<8x8xf32>
    %98 = arith.select %45, %97, %96 : vector<8x8xi1>, vector<8x8xf32>
    %cst_30 = arith.constant dense<0xFF800000> : vector<8xf32>
    %99 = vector.multi_reduction <maximumf>, %98, %cst_30 [1] : vector<8x8xf32> to vector<8xf32>
    %100 = vector.shape_cast %99 : vector<8xf32> to vector<8x1xf32>
    %101 = vector.broadcast %100 : vector<8x1xf32> to vector<8x8xf32>
    %102 = arith.subf %98, %101 : vector<8x8xf32>
    %103 = math.exp %102 : vector<8x8xf32>
    %cst_31 = arith.constant dense<0.000000e+00> : vector<8xf32>
    %104 = vector.multi_reduction <add>, %103, %cst_31 [1] : vector<8x8xf32> to vector<8xf32>
    %105 = vector.shape_cast %104 : vector<8xf32> to vector<8x1xf32>
    %106 = tpu.reciprocal %105 {approx = true} : vector<8x1xf32> -> vector<8x1xf32>
    %107 = vector.broadcast %106 : vector<8x1xf32> to vector<8x8xf32>
    %108 = arith.mulf %103, %107 : vector<8x8xf32>
    %109 = arith.truncf %108 : vector<8x8xf32> to vector<8x8xbf16>
    %cst_32 = arith.constant dense<0.000000e+00> : vector<8x8xf32>
    %110 = tpu.matmul %109, %95, %cst_32 {dimension_numbers = #tpu.dot_dimension_numbers<[1], [0], [0], [1], [0, 0, 1, 1], [], []>} : vector<8x8xbf16>, vector<8x8xbf16>, vector<8x8xf32> -> vector<8x8xf32>
    %c0_33 = arith.constant 0 : index
    %c16 = arith.constant 16 : index
    %111 = vector.load %arg15[%c0_33, %c16] : memref<8x32xf32, #tpu.memory_space<vmem>>, vector<8x8xf32>
    tpu.vector_store %arg15[%c0_33, %c16], %110 {strides = array<i32>} : memref<8x32xf32, #tpu.memory_space<vmem>>, vector<8x8xf32>,
    %112 = vector.extract_strided_slice %40 {offsets = [0, 24], sizes = [8, 8], strides = [1, 1]} : vector<8x32xf32> to vector<8x8xf32>
    %113 = arith.truncf %112 : vector<8x8xf32> to vector<8x8xbf16>
    %114 = vector.extract_strided_slice %41 {offsets = [0, 24], sizes = [8, 8], strides = [1, 1]} : vector<8x32xf32> to vector<8x8xf32>
    %115 = arith.truncf %114 : vector<8x8xf32> to vector<8x8xbf16>
    %116 = vector.extract_strided_slice %42 {offsets = [0, 24], sizes = [8, 8], strides = [1, 1]} : vector<8x32xf32> to vector<8x8xf32>
    %117 = arith.truncf %116 : vector<8x8xf32> to vector<8x8xbf16>
    %cst_34 = arith.constant dense<0.000000e+00> : vector<8x8xf32>
    %118 = tpu.matmul %113, %115, %cst_34 {dimension_numbers = #tpu.dot_dimension_numbers<[1], [1], [0], [0], [0, 0, 1, 0], [], []>} : vector<8x8xbf16>, vector<8x8xbf16>, vector<8x8xf32> -> vector<8x8xf32>
    %cst_35 = arith.constant -1.000000e+30 : f32
    %119 = vector.broadcast %cst_35 : f32 to vector<8x8xf32>
    %120 = arith.select %45, %119, %118 : vector<8x8xi1>, vector<8x8xf32>
    %cst_36 = arith.constant dense<0xFF800000> : vector<8xf32>
    %121 = vector.multi_reduction <maximumf>, %120, %cst_36 [1] : vector<8x8xf32> to vector<8xf32>
    %122 = vector.shape_cast %121 : vector<8xf32> to vector<8x1xf32>
    %123 = vector.broadcast %122 : vector<8x1xf32> to vector<8x8xf32>
    %124 = arith.subf %120, %123 : vector<8x8xf32>
    %125 = math.exp %124 : vector<8x8xf32>
    %cst_37 = arith.constant dense<0.000000e+00> : vector<8xf32>
    %126 = vector.multi_reduction <add>, %125, %cst_37 [1] : vector<8x8xf32> to vector<8xf32>
    %127 = vector.shape_cast %126 : vector<8xf32> to vector<8x1xf32>
    %128 = tpu.reciprocal %127 {approx = true} : vector<8x1xf32> -> vector<8x1xf32>
    %129 = vector.broadcast %128 : vector<8x1xf32> to vector<8x8xf32>
    %130 = arith.mulf %125, %129 : vector<8x8xf32>
    %131 = arith.truncf %130 : vector<8x8xf32> to vector<8x8xbf16>
    %cst_38 = arith.constant dense<0.000000e+00> : vector<8x8xf32>
    %132 = tpu.matmul %131, %117, %cst_38 {dimension_numbers = #tpu.dot_dimension_numbers<[1], [0], [0], [1], [0, 0, 1, 1], [], []>} : vector<8x8xbf16>, vector<8x8xbf16>, vector<8x8xf32> -> vector<8x8xf32>
    %c0_39 = arith.constant 0 : index
    %c24 = arith.constant 24 : index
    %133 = vector.load %arg15[%c0_39, %c24] : memref<8x32xf32, #tpu.memory_space<vmem>>, vector<8x8xf32>
    tpu.vector_store %arg15[%c0_39, %c24], %132 {strides = array<i32>} : memref<8x32xf32, #tpu.memory_space<vmem>>, vector<8x8xf32>,
    %c0_40 = arith.constant 0 : index
    %c0_41 = arith.constant 0 : index
    %134 = vector.load %arg15[%c0_40, %c0_41] : memref<8x32xf32, #tpu.memory_space<vmem>>, vector<8x32xf32>
    %135 = arith.truncf %134 : vector<8x32xf32> to vector<8x32xbf16>
    %c0_42 = arith.constant 0 : index
    %c0_43 = arith.constant 0 : index
    %136 = vector.load %arg6[%c0_42, %c0_43] : memref<32x32xbf16, #tpu.memory_space<vmem>>, vector<32x32xbf16>
    %cst_44 = arith.constant dense<0.000000e+00> : vector<8x32xf32>
    %137 = tpu.matmul %135, %136, %cst_44 {dimension_numbers = #tpu.dot_dimension_numbers<[1], [0], [0], [1], [0, 0, 1, 1], [], []>} : vector<8x32xbf16>, vector<32x32xbf16>, vector<8x32xf32> -> vector<8x32xf32>
    %c0_45 = arith.constant 0 : index
    %c0_46 = arith.constant 0 : index
    %138 = vector.load %arg7[%c0_45, %c0_46] : memref<1x32xf32, #tpu.memory_space<vmem>>, vector<1x32xf32>
    %139 = vector.shape_cast %138 : vector<1x32xf32> to vector<32xf32>
    %140 = vector.shape_cast %139 : vector<32xf32> to vector<1x32xf32>
    %141 = vector.broadcast %140 : vector<1x32xf32> to vector<8x32xf32>
    %142 = arith.addf %137, %141 : vector<8x32xf32>
    %143 = arith.addf %142, %1 : vector<8x32xf32>
    %c0_47 = arith.constant 0 : index
    %c0_48 = arith.constant 0 : index
    %144 = vector.load %arg8[%c0_47, %c0_48] : memref<1x32xf32, #tpu.memory_space<vmem>>, vector<1x32xf32>
    %145 = vector.shape_cast %144 : vector<1x32xf32> to vector<32xf32>
    %c0_49 = arith.constant 0 : index
    %c0_50 = arith.constant 0 : index
    %146 = vector.load %arg9[%c0_49, %c0_50] : memref<1x32xf32, #tpu.memory_space<vmem>>, vector<1x32xf32>
    %147 = vector.shape_cast %146 : vector<1x32xf32> to vector<32xf32>
    %cst_51 = arith.constant dense<0.000000e+00> : vector<8xf32>
    %148 = vector.multi_reduction <add>, %143, %cst_51 [1] : vector<8x32xf32> to vector<8xf32>
    %149 = vector.shape_cast %148 : vector<8xf32> to vector<8x1xf32>
    %cst_52 = arith.constant 3.200000e+01 : f32
    %150 = vector.broadcast %cst_52 : f32 to vector<8x1xf32>
    %151 = arith.divf %149, %150 : vector<8x1xf32>
    %152 = vector.broadcast %151 : vector<8x1xf32> to vector<8x32xf32>
    %153 = arith.subf %143, %152 : vector<8x32xf32>
    %154 = arith.mulf %153, %153 : vector<8x32xf32>
    %cst_53 = arith.constant dense<0.000000e+00> : vector<8xf32>
    %155 = vector.multi_reduction <add>, %154, %cst_53 [1] : vector<8x32xf32> to vector<8xf32>
    %156 = vector.shape_cast %155 : vector<8xf32> to vector<8x1xf32>
    %cst_54 = arith.constant 3.200000e+01 : f32
    %157 = vector.broadcast %cst_54 : f32 to vector<8x1xf32>
    %158 = arith.divf %156, %157 : vector<8x1xf32>
    %159 = vector.broadcast %151 : vector<8x1xf32> to vector<8x32xf32>
    %160 = arith.subf %143, %159 : vector<8x32xf32>
    %cst_55 = arith.constant 9.99999974E-6 : f32
    %161 = vector.broadcast %cst_55 : f32 to vector<8x1xf32>
    %162 = arith.addf %158, %161 : vector<8x1xf32>
    %163 = math.rsqrt %162 : vector<8x1xf32>
    %164 = vector.broadcast %163 : vector<8x1xf32> to vector<8x32xf32>
    %165 = arith.mulf %160, %164 : vector<8x32xf32>
    %166 = vector.shape_cast %145 : vector<32xf32> to vector<1x32xf32>
    %167 = vector.broadcast %166 : vector<1x32xf32> to vector<8x32xf32>
    %168 = arith.mulf %165, %167 : vector<8x32xf32>
    %169 = vector.shape_cast %147 : vector<32xf32> to vector<1x32xf32>
    %170 = vector.broadcast %169 : vector<1x32xf32> to vector<8x32xf32>
    %171 = arith.addf %168, %170 : vector<8x32xf32>
    %172 = arith.truncf %171 : vector<8x32xf32> to vector<8x32xbf16>
    %c0_56 = arith.constant 0 : index
    %c0_57 = arith.constant 0 : index
    %173 = vector.load %arg10[%c0_56, %c0_57] : memref<32x128xbf16, #tpu.memory_space<vmem>>, vector<32x128xbf16>
    %cst_58 = arith.constant dense<0.000000e+00> : vector<8x128xf32>
    %174 = tpu.matmul %172, %173, %cst_58 {dimension_numbers = #tpu.dot_dimension_numbers<[1], [0], [0], [1], [0, 0, 1, 1], [], []>} : vector<8x32xbf16>, vector<32x128xbf16>, vector<8x128xf32> -> vector<8x128xf32>
    %c0_59 = arith.constant 0 : index
    %c0_60 = arith.constant 0 : index
    %175 = vector.load %arg11[%c0_59, %c0_60] : memref<1x128xf32, #tpu.memory_space<vmem>>, vector<1x128xf32>
    %176 = vector.shape_cast %175 : vector<1x128xf32> to vector<128xf32>
    %177 = vector.shape_cast %176 : vector<128xf32> to vector<1x128xf32>
    %178 = vector.broadcast %177 : vector<1x128xf32> to vector<8x128xf32>
    %179 = arith.addf %174, %178 : vector<8x128xf32>
    %cst_61 = arith.constant 1.702000e+00 : f32
    %180 = vector.broadcast %cst_61 : f32 to vector<8x128xf32>
    %181 = arith.mulf %180, %179 : vector<8x128xf32>
    %182 = arith.negf %181 : vector<8x128xf32>
    %183 = math.exp %182 : vector<8x128xf32>
    %cst_62 = arith.constant 1.000000e+00 : f32
    %184 = vector.broadcast %cst_62 : f32 to vector<8x128xf32>
    %185 = arith.addf %184, %183 : vector<8x128xf32>
    %186 = arith.divf %184, %185 : vector<8x128xf32>
    %187 = arith.mulf %179, %186 : vector<8x128xf32>
    %188 = arith.truncf %187 : vector<8x128xf32> to vector<8x128xbf16>
    %c0_63 = arith.constant 0 : index
    %c0_64 = arith.constant 0 : index
    %189 = vector.load %arg12[%c0_63, %c0_64] : memref<128x32xbf16, #tpu.memory_space<vmem>>, vector<128x32xbf16>
    %cst_65 = arith.constant dense<0.000000e+00> : vector<8x32xf32>
    %190 = tpu.matmul %188, %189, %cst_65 {dimension_numbers = #tpu.dot_dimension_numbers<[1], [0], [0], [1], [0, 0, 1, 1], [], []>} : vector<8x128xbf16>, vector<128x32xbf16>, vector<8x32xf32> -> vector<8x32xf32>
    %c0_66 = arith.constant 0 : index
    %c0_67 = arith.constant 0 : index
    %191 = vector.load %arg13[%c0_66, %c0_67] : memref<1x32xf32, #tpu.memory_space<vmem>>, vector<1x32xf32>
    %192 = vector.shape_cast %191 : vector<1x32xf32> to vector<32xf32>
    %193 = vector.shape_cast %192 : vector<32xf32> to vector<1x32xf32>
    %194 = vector.broadcast %193 : vector<1x32xf32> to vector<8x32xf32>
    %195 = arith.addf %190, %194 : vector<8x32xf32>
    %196 = arith.addf %195, %143 : vector<8x32xf32>
    %197 = arith.truncf %196 : vector<8x32xf32> to vector<8x32xbf16>
    %c0_68 = arith.constant 0 : index
    %c0_69 = arith.constant 0 : index
    %198 = vector.load %arg14[%c0_68, %c0_69] : memref<8x32xbf16, #tpu.memory_space<vmem>>, vector<8x32xbf16>
    tpu.vector_store %arg14[%c0_68, %c0_69], %197 {strides = array<i32>} : memref<8x32xbf16, #tpu.memory_space<vmem>>, vector<8x32xbf16>,
    return
  }
  func.func @transform_0(%arg0: i32) -> (i32, i32) {
    %c0_i32 = arith.constant 0 : i32
    %c0_i32_0 = arith.constant 0 : i32
    return %arg0, %c0_i32 : i32, i32
  }
  func.func @transform_1(%arg0: i32) -> (i32, i32) {
    %c0_i32 = arith.constant 0 : i32
    %c0_i32_0 = arith.constant 0 : i32
    %c0_i32_1 = arith.constant 0 : i32
    return %c0_i32, %c0_i32_0 : i32, i32
  }
  func.func @transform_2(%arg0: i32) -> (i32, i32) {
    %c0_i32 = arith.constant 0 : i32
    %c0_i32_0 = arith.constant 0 : i32
    %c0_i32_1 = arith.constant 0 : i32
    return %c0_i32, %c0_i32_0 : i32, i32
  }
  func.func @transform_3(%arg0: i32) -> (i32, i32) {
    %c0_i32 = arith.constant 0 : i32
    %c0_i32_0 = arith.constant 0 : i32
    %c0_i32_1 = arith.constant 0 : i32
    return %c0_i32, %c0_i32_0 : i32, i32
  }
  func.func @transform_4(%arg0: i32) -> (i32, i32) {
    %c0_i32 = arith.constant 0 : i32
    %c0_i32_0 = arith.constant 0 : i32
    %c0_i32_1 = arith.constant 0 : i32
    return %c0_i32, %c0_i32_0 : i32, i32
  }
  func.func @transform_5(%arg0: i32) -> (i32, i32) {
    %c0_i32 = arith.constant 0 : i32
    %c0_i32_0 = arith.constant 0 : i32
    %c0_i32_1 = arith.constant 0 : i32
    return %c0_i32, %c0_i32_0 : i32, i32
  }
  func.func @transform_6(%arg0: i32) -> (i32, i32) {
    %c0_i32 = arith.constant 0 : i32
    %c0_i32_0 = arith.constant 0 : i32
    %c0_i32_1 = arith.constant 0 : i32
    return %c0_i32, %c0_i32_0 : i32, i32
  }
  func.func @transform_7(%arg0: i32) -> (i32, i32) {
    %c0_i32 = arith.constant 0 : i32
    %c0_i32_0 = arith.constant 0 : i32
    %c0_i32_1 = arith.constant 0 : i32
    return %c0_i32, %c0_i32_0 : i32, i32
  }
  func.func @transform_8(%arg0: i32) -> (i32, i32) {
    %c0_i32 = arith.constant 0 : i32
    %c0_i32_0 = arith.constant 0 : i32
    %c0_i32_1 = arith.constant 0 : i32
    return %c0_i32, %c0_i32_0 : i32, i32
  }
  func.func @transform_9(%arg0: i32) -> (i32, i32) {
    %c0_i32 = arith.constant 0 : i32
    %c0_i32_0 = arith.constant 0 : i32
    %c0_i32_1 = arith.constant 0 : i32
    return %c0_i32, %c0_i32_0 : i32, i32
  }
  func.func @transform_10(%arg0: i32) -> (i32, i32) {
    %c0_i32 = arith.constant 0 : i32
    %c0_i32_0 = arith.constant 0 : i32
    %c0_i32_1 = arith.constant 0 : i32
    return %c0_i32, %c0_i32_0 : i32, i32
  }
  func.func @transform_11(%arg0: i32) -> (i32, i32) {
    %c0_i32 = arith.constant 0 : i32
    %c0_i32_0 = arith.constant 0 : i32
    %c0_i32_1 = arith.constant 0 : i32
    return %c0_i32, %c0_i32_0 : i32, i32
  }
  func.func @transform_12(%arg0: i32) -> (i32, i32) {
    %c0_i32 = arith.constant 0 : i32
    %c0_i32_0 = arith.constant 0 : i32
    %c0_i32_1 = arith.constant 0 : i32
    return %c0_i32, %c0_i32_0 : i32, i32
  }
  func.func @transform_13(%arg0: i32) -> (i32, i32) {
    %c0_i32 = arith.constant 0 : i32
    %c0_i32_0 = arith.constant 0 : i32
    return %arg0, %c0_i32 : i32, i32
  }
}

module attributes {stable_mosaic.version = 11 : i64} {
  func.func @layer_kernel(%arg0: i32, %arg1: memref<8x32xbf16, #tpu.memory_space<vmem>>, %arg2: memref<1x32xf32, #tpu.memory_space<vmem>>, %arg3: memref<1x32xf32, #tpu.memory_space<vmem>>, %arg4: memref<32x96xbf16, #tpu.memory_space<vmem>>, %arg5: memref<1x96xf32, #tpu.memory_space<vmem>>, %arg6: memref<32x32xbf16, #tpu.memory_space<vmem>>, %arg7: memref<1x32xf32, #tpu.memory_space<vmem>>, %arg8: memref<1x32xf32, #tpu.memory_space<vmem>>, %arg9: memref<1x32xf32, #tpu.memory_space<vmem>>, %arg10: memref<32x128xbf16, #tpu.memory_space<vmem>>, %arg11: memref<1x128xf32, #tpu.memory_space<vmem>>, %arg12: memref<128x32xbf16, #tpu.memory_space<vmem>>, %arg13: memref<1x32xf32, #tpu.memory_space<vmem>>, %arg14: memref<1x32xf32, #tpu.memory_space<vmem>>, %arg15: memref<1x32xf32, #tpu.memory_space<vmem>>, %arg16: memref<8x32xf32, #tpu.memory_space<vmem>>, %arg17: memref<8x32xf32, #tpu.memory_space<vmem>>) attributes {dimension_semantics = [#tpu.dimension_semantics<parallel>], iteration_bounds = array<i64: 2>, scalar_prefetch = 0 : i64, scratch_operands = 1 : i64, tpu.core_type = #tpu.core_type<tc>, window_params = [{transform_indices = @transform_0, window_bounds = array<i64: 8, 32>}, {pipeline_mode = #tpu.pipeline_mode<synchronous>, transform_indices = @transform_1, window_bounds = array<i64: 1, 32>}, {pipeline_mode = #tpu.pipeline_mode<synchronous>, transform_indices = @transform_2, window_bounds = array<i64: 1, 32>}, {pipeline_mode = #tpu.pipeline_mode<synchronous>, transform_indices = @transform_3, window_bounds = array<i64: 32, 96>}, {pipeline_mode = #tpu.pipeline_mode<synchronous>, transform_indices = @transform_4, window_bounds = array<i64: 1, 96>}, {pipeline_mode = #tpu.pipeline_mode<synchronous>, transform_indices = @transform_5, window_bounds = array<i64: 32, 32>}, {pipeline_mode = #tpu.pipeline_mode<synchronous>, transform_indices = @transform_6, window_bounds = array<i64: 1, 32>}, {pipeline_mode = #tpu.pipeline_mode<synchronous>, transform_indices = @transform_7, window_bounds = array<i64: 1, 32>}, {pipeline_mode = #tpu.pipeline_mode<synchronous>, transform_indices = @transform_8, window_bounds = array<i64: 1, 32>}, {pipeline_mode = #tpu.pipeline_mode<synchronous>, transform_indices = @transform_9, window_bounds = array<i64: 32, 128>}, {pipeline_mode = #tpu.pipeline_mode<synchronous>, transform_indices = @transform_10, window_bounds = array<i64: 1, 128>}, {pipeline_mode = #tpu.pipeline_mode<synchronous>, transform_indices = @transform_11, window_bounds = array<i64: 128, 32>}, {pipeline_mode = #tpu.pipeline_mode<synchronous>, transform_indices = @transform_12, window_bounds = array<i64: 1, 32>}, {pipeline_mode = #tpu.pipeline_mode<synchronous>, transform_indices = @transform_13, window_bounds = array<i64: 1, 32>}, {pipeline_mode = #tpu.pipeline_mode<synchronous>, transform_indices = @transform_14, window_bounds = array<i64: 1, 32>}, {transform_indices = @transform_15, window_bounds = array<i64: 8, 32>}]} {
    %c0 = arith.constant 0 : index
    %c0_0 = arith.constant 0 : index
    %0 = vector.load %arg1[%c0, %c0_0] : memref<8x32xbf16, #tpu.memory_space<vmem>>, vector<8x32xbf16>
    %1 = arith.extf %0 : vector<8x32xbf16> to vector<8x32xf32>
    %c0_1 = arith.constant 0 : index
    %c0_2 = arith.constant 0 : index
    %2 = vector.load %arg2[%c0_1, %c0_2] : memref<1x32xf32, #tpu.memory_space<vmem>>, vector<1x32xf32>
    %3 = vector.shape_cast %2 : vector<1x32xf32> to vector<32xf32>
    %c0_3 = arith.constant 0 : index
    %c0_4 = arith.constant 0 : index
    %4 = vector.load %arg3[%c0_3, %c0_4] : memref<1x32xf32, #tpu.memory_space<vmem>>, vector<1x32xf32>
    %5 = vector.shape_cast %4 : vector<1x32xf32> to vector<32xf32>
    %cst = arith.constant dense<0.000000e+00> : vector<8xf32>
    %6 = vector.multi_reduction <add>, %1, %cst [1] : vector<8x32xf32> to vector<8xf32>
    %7 = vector.shape_cast %6 : vector<8xf32> to vector<8x1xf32>
    %cst_5 = arith.constant 3.200000e+01 : f32
    %8 = vector.broadcast %cst_5 : f32 to vector<8x1xf32>
    %9 = arith.divf %7, %8 : vector<8x1xf32>
    %10 = vector.broadcast %9 : vector<8x1xf32> to vector<8x32xf32>
    %11 = arith.subf %1, %10 : vector<8x32xf32>
    %12 = arith.mulf %11, %11 : vector<8x32xf32>
    %cst_6 = arith.constant dense<0.000000e+00> : vector<8xf32>
    %13 = vector.multi_reduction <add>, %12, %cst_6 [1] : vector<8x32xf32> to vector<8xf32>
    %14 = vector.shape_cast %13 : vector<8xf32> to vector<8x1xf32>
    %cst_7 = arith.constant 3.200000e+01 : f32
    %15 = vector.broadcast %cst_7 : f32 to vector<8x1xf32>
    %16 = arith.divf %14, %15 : vector<8x1xf32>
    %17 = vector.broadcast %9 : vector<8x1xf32> to vector<8x32xf32>
    %18 = arith.subf %1, %17 : vector<8x32xf32>
    %cst_8 = arith.constant 9.99999974E-6 : f32
    %19 = vector.broadcast %cst_8 : f32 to vector<8x1xf32>
    %20 = arith.addf %16, %19 : vector<8x1xf32>
    %21 = math.rsqrt %20 : vector<8x1xf32>
    %22 = vector.broadcast %21 : vector<8x1xf32> to vector<8x32xf32>
    %23 = arith.mulf %18, %22 : vector<8x32xf32>
    %24 = vector.shape_cast %3 : vector<32xf32> to vector<1x32xf32>
    %25 = vector.broadcast %24 : vector<1x32xf32> to vector<8x32xf32>
    %26 = arith.mulf %23, %25 : vector<8x32xf32>
    %27 = vector.shape_cast %5 : vector<32xf32> to vector<1x32xf32>
    %28 = vector.broadcast %27 : vector<1x32xf32> to vector<8x32xf32>
    %29 = arith.addf %26, %28 : vector<8x32xf32>
    %30 = arith.truncf %29 : vector<8x32xf32> to vector<8x32xbf16>
    %c0_9 = arith.constant 0 : index
    %c0_10 = arith.constant 0 : index
    %31 = vector.load %arg4[%c0_9, %c0_10] : memref<32x96xbf16, #tpu.memory_space<vmem>>, vector<32x96xbf16>
    %cst_11 = arith.constant dense<0.000000e+00> : vector<8x96xf32>
    %32 = tpu.matmul %30, %31, %cst_11 {dimension_numbers = #tpu.dot_dimension_numbers<[1], [0], [0], [1], [0, 0, 1, 1], [], []>} : vector<8x32xbf16>, vector<32x96xbf16>, vector<8x96xf32> -> vector<8x96xf32>
    %c0_12 = arith.constant 0 : index
    %c0_13 = arith.constant 0 : index
    %33 = vector.load %arg5[%c0_12, %c0_13] : memref<1x96xf32, #tpu.memory_space<vmem>>, vector<1x96xf32>
    %34 = vector.shape_cast %33 : vector<1x96xf32> to vector<96xf32>
    %35 = vector.shape_cast %34 : vector<96xf32> to vector<1x96xf32>
    %36 = vector.broadcast %35 : vector<1x96xf32> to vector<8x96xf32>
    %37 = arith.addf %32, %36 : vector<8x96xf32>
    %38 = vector.extract_strided_slice %37 {offsets = [0, 0], sizes = [8, 32], strides = [1, 1]} : vector<8x96xf32> to vector<8x32xf32>
    %cst_14 = arith.constant 0.353553385 : f32
    %39 = vector.broadcast %cst_14 : f32 to vector<8x32xf32>
    %40 = arith.mulf %38, %39 : vector<8x32xf32>
    %41 = vector.extract_strided_slice %37 {offsets = [0, 32], sizes = [8, 32], strides = [1, 1]} : vector<8x96xf32> to vector<8x32xf32>
    %42 = vector.extract_strided_slice %37 {offsets = [0, 64], sizes = [8, 32], strides = [1, 1]} : vector<8x96xf32> to vector<8x32xf32>
    %43 = tpu.iota {dimensions = array<i32: 0>} : vector<8x8xi32>
    %44 = tpu.iota {dimensions = array<i32: 1>} : vector<8x8xi32>
    %45 = arith.cmpi sgt, %44, %43 : vector<8x8xi32>
    %46 = vector.extract_strided_slice %40 {offsets = [0, 0], sizes = [8, 8], strides = [1, 1]} : vector<8x32xf32> to vector<8x8xf32>
    %47 = arith.truncf %46 : vector<8x8xf32> to vector<8x8xbf16>
    %48 = vector.extract_strided_slice %41 {offsets = [0, 0], sizes = [8, 8], strides = [1, 1]} : vector<8x32xf32> to vector<8x8xf32>
    %49 = arith.truncf %48 : vector<8x8xf32> to vector<8x8xbf16>
    %50 = vector.extract_strided_slice %42 {offsets = [0, 0], sizes = [8, 8], strides = [1, 1]} : vector<8x32xf32> to vector<8x8xf32>
    %51 = arith.truncf %50 : vector<8x8xf32> to vector<8x8xbf16>
    %cst_15 = arith.constant dense<0.000000e+00> : vector<8x8xf32>
    %52 = tpu.matmul %47, %49, %cst_15 {dimension_numbers = #tpu.dot_dimension_numbers<[1], [1], [0], [0], [0, 0, 1, 0], [], []>} : vector<8x8xbf16>, vector<8x8xbf16>, vector<8x8xf32> -> vector<8x8xf32>
    %cst_16 = arith.constant -1.000000e+30 : f32
    %53 = vector.broadcast %cst_16 : f32 to vector<8x8xf32>
    %54 = arith.select %45, %53, %52 : vector<8x8xi1>, vector<8x8xf32>
    %cst_17 = arith.constant dense<0xFF800000> : vector<8xf32>
    %55 = vector.multi_reduction <maximumf>, %54, %cst_17 [1] : vector<8x8xf32> to vector<8xf32>
    %56 = vector.shape_cast %55 : vector<8xf32> to vector<8x1xf32>
    %57 = vector.broadcast %56 : vector<8x1xf32> to vector<8x8xf32>
    %58 = arith.subf %54, %57 : vector<8x8xf32>
    %59 = math.exp %58 : vector<8x8xf32>
    %cst_18 = arith.constant dense<0.000000e+00> : vector<8xf32>
    %60 = vector.multi_reduction <add>, %59, %cst_18 [1] : vector<8x8xf32> to vector<8xf32>
    %61 = vector.shape_cast %60 : vector<8xf32> to vector<8x1xf32>
    %62 = tpu.reciprocal %61 {approx = true} : vector<8x1xf32> -> vector<8x1xf32>
    %63 = vector.broadcast %62 : vector<8x1xf32> to vector<8x8xf32>
    %64 = arith.mulf %59, %63 : vector<8x8xf32>
    %65 = arith.truncf %64 : vector<8x8xf32> to vector<8x8xbf16>
    %cst_19 = arith.constant dense<0.000000e+00> : vector<8x8xf32>
    %66 = tpu.matmul %65, %51, %cst_19 {dimension_numbers = #tpu.dot_dimension_numbers<[1], [0], [0], [1], [0, 0, 1, 1], [], []>} : vector<8x8xbf16>, vector<8x8xbf16>, vector<8x8xf32> -> vector<8x8xf32>
    %c0_20 = arith.constant 0 : index
    %c0_21 = arith.constant 0 : index
    %67 = vector.load %arg17[%c0_20, %c0_21] : memref<8x32xf32, #tpu.memory_space<vmem>>, vector<8x8xf32>
    tpu.vector_store %arg17[%c0_20, %c0_21], %66 {strides = array<i32>} : memref<8x32xf32, #tpu.memory_space<vmem>>, vector<8x8xf32>,
    %68 = vector.extract_strided_slice %40 {offsets = [0, 8], sizes = [8, 8], strides = [1, 1]} : vector<8x32xf32> to vector<8x8xf32>
    %69 = arith.truncf %68 : vector<8x8xf32> to vector<8x8xbf16>
    %70 = vector.extract_strided_slice %41 {offsets = [0, 8], sizes = [8, 8], strides = [1, 1]} : vector<8x32xf32> to vector<8x8xf32>
    %71 = arith.truncf %70 : vector<8x8xf32> to vector<8x8xbf16>
    %72 = vector.extract_strided_slice %42 {offsets = [0, 8], sizes = [8, 8], strides = [1, 1]} : vector<8x32xf32> to vector<8x8xf32>
    %73 = arith.truncf %72 : vector<8x8xf32> to vector<8x8xbf16>
    %cst_22 = arith.constant dense<0.000000e+00> : vector<8x8xf32>
    %74 = tpu.matmul %69, %71, %cst_22 {dimension_numbers = #tpu.dot_dimension_numbers<[1], [1], [0], [0], [0, 0, 1, 0], [], []>} : vector<8x8xbf16>, vector<8x8xbf16>, vector<8x8xf32> -> vector<8x8xf32>
    %cst_23 = arith.constant -1.000000e+30 : f32
    %75 = vector.broadcast %cst_23 : f32 to vector<8x8xf32>
    %76 = arith.select %45, %75, %74 : vector<8x8xi1>, vector<8x8xf32>
    %cst_24 = arith.constant dense<0xFF800000> : vector<8xf32>
    %77 = vector.multi_reduction <maximumf>, %76, %cst_24 [1] : vector<8x8xf32> to vector<8xf32>
    %78 = vector.shape_cast %77 : vector<8xf32> to vector<8x1xf32>
    %79 = vector.broadcast %78 : vector<8x1xf32> to vector<8x8xf32>
    %80 = arith.subf %76, %79 : vector<8x8xf32>
    %81 = math.exp %80 : vector<8x8xf32>
    %cst_25 = arith.constant dense<0.000000e+00> : vector<8xf32>
    %82 = vector.multi_reduction <add>, %81, %cst_25 [1] : vector<8x8xf32> to vector<8xf32>
    %83 = vector.shape_cast %82 : vector<8xf32> to vector<8x1xf32>
    %84 = tpu.reciprocal %83 {approx = true} : vector<8x1xf32> -> vector<8x1xf32>
    %85 = vector.broadcast %84 : vector<8x1xf32> to vector<8x8xf32>
    %86 = arith.mulf %81, %85 : vector<8x8xf32>
    %87 = arith.truncf %86 : vector<8x8xf32> to vector<8x8xbf16>
    %cst_26 = arith.constant dense<0.000000e+00> : vector<8x8xf32>
    %88 = tpu.matmul %87, %73, %cst_26 {dimension_numbers = #tpu.dot_dimension_numbers<[1], [0], [0], [1], [0, 0, 1, 1], [], []>} : vector<8x8xbf16>, vector<8x8xbf16>, vector<8x8xf32> -> vector<8x8xf32>
    %c0_27 = arith.constant 0 : index
    %c8 = arith.constant 8 : index
    %89 = vector.load %arg17[%c0_27, %c8] : memref<8x32xf32, #tpu.memory_space<vmem>>, vector<8x8xf32>
    tpu.vector_store %arg17[%c0_27, %c8], %88 {strides = array<i32>} : memref<8x32xf32, #tpu.memory_space<vmem>>, vector<8x8xf32>,
    %90 = vector.extract_strided_slice %40 {offsets = [0, 16], sizes = [8, 8], strides = [1, 1]} : vector<8x32xf32> to vector<8x8xf32>
    %91 = arith.truncf %90 : vector<8x8xf32> to vector<8x8xbf16>
    %92 = vector.extract_strided_slice %41 {offsets = [0, 16], sizes = [8, 8], strides = [1, 1]} : vector<8x32xf32> to vector<8x8xf32>
    %93 = arith.truncf %92 : vector<8x8xf32> to vector<8x8xbf16>
    %94 = vector.extract_strided_slice %42 {offsets = [0, 16], sizes = [8, 8], strides = [1, 1]} : vector<8x32xf32> to vector<8x8xf32>
    %95 = arith.truncf %94 : vector<8x8xf32> to vector<8x8xbf16>
    %cst_28 = arith.constant dense<0.000000e+00> : vector<8x8xf32>
    %96 = tpu.matmul %91, %93, %cst_28 {dimension_numbers = #tpu.dot_dimension_numbers<[1], [1], [0], [0], [0, 0, 1, 0], [], []>} : vector<8x8xbf16>, vector<8x8xbf16>, vector<8x8xf32> -> vector<8x8xf32>
    %cst_29 = arith.constant -1.000000e+30 : f32
    %97 = vector.broadcast %cst_29 : f32 to vector<8x8xf32>
    %98 = arith.select %45, %97, %96 : vector<8x8xi1>, vector<8x8xf32>
    %cst_30 = arith.constant dense<0xFF800000> : vector<8xf32>
    %99 = vector.multi_reduction <maximumf>, %98, %cst_30 [1] : vector<8x8xf32> to vector<8xf32>
    %100 = vector.shape_cast %99 : vector<8xf32> to vector<8x1xf32>
    %101 = vector.broadcast %100 : vector<8x1xf32> to vector<8x8xf32>
    %102 = arith.subf %98, %101 : vector<8x8xf32>
    %103 = math.exp %102 : vector<8x8xf32>
    %cst_31 = arith.constant dense<0.000000e+00> : vector<8xf32>
    %104 = vector.multi_reduction <add>, %103, %cst_31 [1] : vector<8x8xf32> to vector<8xf32>
    %105 = vector.shape_cast %104 : vector<8xf32> to vector<8x1xf32>
    %106 = tpu.reciprocal %105 {approx = true} : vector<8x1xf32> -> vector<8x1xf32>
    %107 = vector.broadcast %106 : vector<8x1xf32> to vector<8x8xf32>
    %108 = arith.mulf %103, %107 : vector<8x8xf32>
    %109 = arith.truncf %108 : vector<8x8xf32> to vector<8x8xbf16>
    %cst_32 = arith.constant dense<0.000000e+00> : vector<8x8xf32>
    %110 = tpu.matmul %109, %95, %cst_32 {dimension_numbers = #tpu.dot_dimension_numbers<[1], [0], [0], [1], [0, 0, 1, 1], [], []>} : vector<8x8xbf16>, vector<8x8xbf16>, vector<8x8xf32> -> vector<8x8xf32>
    %c0_33 = arith.constant 0 : index
    %c16 = arith.constant 16 : index
    %111 = vector.load %arg17[%c0_33, %c16] : memref<8x32xf32, #tpu.memory_space<vmem>>, vector<8x8xf32>
    tpu.vector_store %arg17[%c0_33, %c16], %110 {strides = array<i32>} : memref<8x32xf32, #tpu.memory_space<vmem>>, vector<8x8xf32>,
    %112 = vector.extract_strided_slice %40 {offsets = [0, 24], sizes = [8, 8], strides = [1, 1]} : vector<8x32xf32> to vector<8x8xf32>
    %113 = arith.truncf %112 : vector<8x8xf32> to vector<8x8xbf16>
    %114 = vector.extract_strided_slice %41 {offsets = [0, 24], sizes = [8, 8], strides = [1, 1]} : vector<8x32xf32> to vector<8x8xf32>
    %115 = arith.truncf %114 : vector<8x8xf32> to vector<8x8xbf16>
    %116 = vector.extract_strided_slice %42 {offsets = [0, 24], sizes = [8, 8], strides = [1, 1]} : vector<8x32xf32> to vector<8x8xf32>
    %117 = arith.truncf %116 : vector<8x8xf32> to vector<8x8xbf16>
    %cst_34 = arith.constant dense<0.000000e+00> : vector<8x8xf32>
    %118 = tpu.matmul %113, %115, %cst_34 {dimension_numbers = #tpu.dot_dimension_numbers<[1], [1], [0], [0], [0, 0, 1, 0], [], []>} : vector<8x8xbf16>, vector<8x8xbf16>, vector<8x8xf32> -> vector<8x8xf32>
    %cst_35 = arith.constant -1.000000e+30 : f32
    %119 = vector.broadcast %cst_35 : f32 to vector<8x8xf32>
    %120 = arith.select %45, %119, %118 : vector<8x8xi1>, vector<8x8xf32>
    %cst_36 = arith.constant dense<0xFF800000> : vector<8xf32>
    %121 = vector.multi_reduction <maximumf>, %120, %cst_36 [1] : vector<8x8xf32> to vector<8xf32>
    %122 = vector.shape_cast %121 : vector<8xf32> to vector<8x1xf32>
    %123 = vector.broadcast %122 : vector<8x1xf32> to vector<8x8xf32>
    %124 = arith.subf %120, %123 : vector<8x8xf32>
    %125 = math.exp %124 : vector<8x8xf32>
    %cst_37 = arith.constant dense<0.000000e+00> : vector<8xf32>
    %126 = vector.multi_reduction <add>, %125, %cst_37 [1] : vector<8x8xf32> to vector<8xf32>
    %127 = vector.shape_cast %126 : vector<8xf32> to vector<8x1xf32>
    %128 = tpu.reciprocal %127 {approx = true} : vector<8x1xf32> -> vector<8x1xf32>
    %129 = vector.broadcast %128 : vector<8x1xf32> to vector<8x8xf32>
    %130 = arith.mulf %125, %129 : vector<8x8xf32>
    %131 = arith.truncf %130 : vector<8x8xf32> to vector<8x8xbf16>
    %cst_38 = arith.constant dense<0.000000e+00> : vector<8x8xf32>
    %132 = tpu.matmul %131, %117, %cst_38 {dimension_numbers = #tpu.dot_dimension_numbers<[1], [0], [0], [1], [0, 0, 1, 1], [], []>} : vector<8x8xbf16>, vector<8x8xbf16>, vector<8x8xf32> -> vector<8x8xf32>
    %c0_39 = arith.constant 0 : index
    %c24 = arith.constant 24 : index
    %133 = vector.load %arg17[%c0_39, %c24] : memref<8x32xf32, #tpu.memory_space<vmem>>, vector<8x8xf32>
    tpu.vector_store %arg17[%c0_39, %c24], %132 {strides = array<i32>} : memref<8x32xf32, #tpu.memory_space<vmem>>, vector<8x8xf32>,
    %c0_40 = arith.constant 0 : index
    %c0_41 = arith.constant 0 : index
    %134 = vector.load %arg17[%c0_40, %c0_41] : memref<8x32xf32, #tpu.memory_space<vmem>>, vector<8x32xf32>
    %135 = arith.truncf %134 : vector<8x32xf32> to vector<8x32xbf16>
    %c0_42 = arith.constant 0 : index
    %c0_43 = arith.constant 0 : index
    %136 = vector.load %arg6[%c0_42, %c0_43] : memref<32x32xbf16, #tpu.memory_space<vmem>>, vector<32x32xbf16>
    %cst_44 = arith.constant dense<0.000000e+00> : vector<8x32xf32>
    %137 = tpu.matmul %135, %136, %cst_44 {dimension_numbers = #tpu.dot_dimension_numbers<[1], [0], [0], [1], [0, 0, 1, 1], [], []>} : vector<8x32xbf16>, vector<32x32xbf16>, vector<8x32xf32> -> vector<8x32xf32>
    %c0_45 = arith.constant 0 : index
    %c0_46 = arith.constant 0 : index
    %138 = vector.load %arg7[%c0_45, %c0_46] : memref<1x32xf32, #tpu.memory_space<vmem>>, vector<1x32xf32>
    %139 = vector.shape_cast %138 : vector<1x32xf32> to vector<32xf32>
    %140 = vector.shape_cast %139 : vector<32xf32> to vector<1x32xf32>
    %141 = vector.broadcast %140 : vector<1x32xf32> to vector<8x32xf32>
    %142 = arith.addf %137, %141 : vector<8x32xf32>
    %143 = arith.addf %142, %1 : vector<8x32xf32>
    %c0_47 = arith.constant 0 : index
    %c0_48 = arith.constant 0 : index
    %144 = vector.load %arg8[%c0_47, %c0_48] : memref<1x32xf32, #tpu.memory_space<vmem>>, vector<1x32xf32>
    %145 = vector.shape_cast %144 : vector<1x32xf32> to vector<32xf32>
    %c0_49 = arith.constant 0 : index
    %c0_50 = arith.constant 0 : index
    %146 = vector.load %arg9[%c0_49, %c0_50] : memref<1x32xf32, #tpu.memory_space<vmem>>, vector<1x32xf32>
    %147 = vector.shape_cast %146 : vector<1x32xf32> to vector<32xf32>
    %cst_51 = arith.constant dense<0.000000e+00> : vector<8xf32>
    %148 = vector.multi_reduction <add>, %143, %cst_51 [1] : vector<8x32xf32> to vector<8xf32>
    %149 = vector.shape_cast %148 : vector<8xf32> to vector<8x1xf32>
    %cst_52 = arith.constant 3.200000e+01 : f32
    %150 = vector.broadcast %cst_52 : f32 to vector<8x1xf32>
    %151 = arith.divf %149, %150 : vector<8x1xf32>
    %152 = vector.broadcast %151 : vector<8x1xf32> to vector<8x32xf32>
    %153 = arith.subf %143, %152 : vector<8x32xf32>
    %154 = arith.mulf %153, %153 : vector<8x32xf32>
    %cst_53 = arith.constant dense<0.000000e+00> : vector<8xf32>
    %155 = vector.multi_reduction <add>, %154, %cst_53 [1] : vector<8x32xf32> to vector<8xf32>
    %156 = vector.shape_cast %155 : vector<8xf32> to vector<8x1xf32>
    %cst_54 = arith.constant 3.200000e+01 : f32
    %157 = vector.broadcast %cst_54 : f32 to vector<8x1xf32>
    %158 = arith.divf %156, %157 : vector<8x1xf32>
    %159 = vector.broadcast %151 : vector<8x1xf32> to vector<8x32xf32>
    %160 = arith.subf %143, %159 : vector<8x32xf32>
    %cst_55 = arith.constant 9.99999974E-6 : f32
    %161 = vector.broadcast %cst_55 : f32 to vector<8x1xf32>
    %162 = arith.addf %158, %161 : vector<8x1xf32>
    %163 = math.rsqrt %162 : vector<8x1xf32>
    %164 = vector.broadcast %163 : vector<8x1xf32> to vector<8x32xf32>
    %165 = arith.mulf %160, %164 : vector<8x32xf32>
    %166 = vector.shape_cast %145 : vector<32xf32> to vector<1x32xf32>
    %167 = vector.broadcast %166 : vector<1x32xf32> to vector<8x32xf32>
    %168 = arith.mulf %165, %167 : vector<8x32xf32>
    %169 = vector.shape_cast %147 : vector<32xf32> to vector<1x32xf32>
    %170 = vector.broadcast %169 : vector<1x32xf32> to vector<8x32xf32>
    %171 = arith.addf %168, %170 : vector<8x32xf32>
    %172 = arith.truncf %171 : vector<8x32xf32> to vector<8x32xbf16>
    %c0_56 = arith.constant 0 : index
    %c0_57 = arith.constant 0 : index
    %173 = vector.load %arg10[%c0_56, %c0_57] : memref<32x128xbf16, #tpu.memory_space<vmem>>, vector<32x128xbf16>
    %cst_58 = arith.constant dense<0.000000e+00> : vector<8x128xf32>
    %174 = tpu.matmul %172, %173, %cst_58 {dimension_numbers = #tpu.dot_dimension_numbers<[1], [0], [0], [1], [0, 0, 1, 1], [], []>} : vector<8x32xbf16>, vector<32x128xbf16>, vector<8x128xf32> -> vector<8x128xf32>
    %c0_59 = arith.constant 0 : index
    %c0_60 = arith.constant 0 : index
    %175 = vector.load %arg11[%c0_59, %c0_60] : memref<1x128xf32, #tpu.memory_space<vmem>>, vector<1x128xf32>
    %176 = vector.shape_cast %175 : vector<1x128xf32> to vector<128xf32>
    %177 = vector.shape_cast %176 : vector<128xf32> to vector<1x128xf32>
    %178 = vector.broadcast %177 : vector<1x128xf32> to vector<8x128xf32>
    %179 = arith.addf %174, %178 : vector<8x128xf32>
    %cst_61 = arith.constant 1.702000e+00 : f32
    %180 = vector.broadcast %cst_61 : f32 to vector<8x128xf32>
    %181 = arith.mulf %180, %179 : vector<8x128xf32>
    %182 = arith.negf %181 : vector<8x128xf32>
    %183 = math.exp %182 : vector<8x128xf32>
    %cst_62 = arith.constant 1.000000e+00 : f32
    %184 = vector.broadcast %cst_62 : f32 to vector<8x128xf32>
    %185 = arith.addf %184, %183 : vector<8x128xf32>
    %186 = arith.divf %184, %185 : vector<8x128xf32>
    %187 = arith.mulf %179, %186 : vector<8x128xf32>
    %188 = arith.truncf %187 : vector<8x128xf32> to vector<8x128xbf16>
    %c0_63 = arith.constant 0 : index
    %c0_64 = arith.constant 0 : index
    %189 = vector.load %arg12[%c0_63, %c0_64] : memref<128x32xbf16, #tpu.memory_space<vmem>>, vector<128x32xbf16>
    %cst_65 = arith.constant dense<0.000000e+00> : vector<8x32xf32>
    %190 = tpu.matmul %188, %189, %cst_65 {dimension_numbers = #tpu.dot_dimension_numbers<[1], [0], [0], [1], [0, 0, 1, 1], [], []>} : vector<8x128xbf16>, vector<128x32xbf16>, vector<8x32xf32> -> vector<8x32xf32>
    %c0_66 = arith.constant 0 : index
    %c0_67 = arith.constant 0 : index
    %191 = vector.load %arg13[%c0_66, %c0_67] : memref<1x32xf32, #tpu.memory_space<vmem>>, vector<1x32xf32>
    %192 = vector.shape_cast %191 : vector<1x32xf32> to vector<32xf32>
    %193 = vector.shape_cast %192 : vector<32xf32> to vector<1x32xf32>
    %194 = vector.broadcast %193 : vector<1x32xf32> to vector<8x32xf32>
    %195 = arith.addf %190, %194 : vector<8x32xf32>
    %196 = arith.addf %195, %143 : vector<8x32xf32>
    %c0_68 = arith.constant 0 : index
    %c0_69 = arith.constant 0 : index
    %197 = vector.load %arg14[%c0_68, %c0_69] : memref<1x32xf32, #tpu.memory_space<vmem>>, vector<1x32xf32>
    %198 = vector.shape_cast %197 : vector<1x32xf32> to vector<32xf32>
    %c0_70 = arith.constant 0 : index
    %c0_71 = arith.constant 0 : index
    %199 = vector.load %arg15[%c0_70, %c0_71] : memref<1x32xf32, #tpu.memory_space<vmem>>, vector<1x32xf32>
    %200 = vector.shape_cast %199 : vector<1x32xf32> to vector<32xf32>
    %cst_72 = arith.constant dense<0.000000e+00> : vector<8xf32>
    %201 = vector.multi_reduction <add>, %196, %cst_72 [1] : vector<8x32xf32> to vector<8xf32>
    %202 = vector.shape_cast %201 : vector<8xf32> to vector<8x1xf32>
    %cst_73 = arith.constant 3.200000e+01 : f32
    %203 = vector.broadcast %cst_73 : f32 to vector<8x1xf32>
    %204 = arith.divf %202, %203 : vector<8x1xf32>
    %205 = vector.broadcast %204 : vector<8x1xf32> to vector<8x32xf32>
    %206 = arith.subf %196, %205 : vector<8x32xf32>
    %207 = arith.mulf %206, %206 : vector<8x32xf32>
    %cst_74 = arith.constant dense<0.000000e+00> : vector<8xf32>
    %208 = vector.multi_reduction <add>, %207, %cst_74 [1] : vector<8x32xf32> to vector<8xf32>
    %209 = vector.shape_cast %208 : vector<8xf32> to vector<8x1xf32>
    %cst_75 = arith.constant 3.200000e+01 : f32
    %210 = vector.broadcast %cst_75 : f32 to vector<8x1xf32>
    %211 = arith.divf %209, %210 : vector<8x1xf32>
    %212 = vector.broadcast %204 : vector<8x1xf32> to vector<8x32xf32>
    %213 = arith.subf %196, %212 : vector<8x32xf32>
    %cst_76 = arith.constant 9.99999974E-6 : f32
    %214 = vector.broadcast %cst_76 : f32 to vector<8x1xf32>
    %215 = arith.addf %211, %214 : vector<8x1xf32>
    %216 = math.rsqrt %215 : vector<8x1xf32>
    %217 = vector.broadcast %216 : vector<8x1xf32> to vector<8x32xf32>
    %218 = arith.mulf %213, %217 : vector<8x32xf32>
    %219 = vector.shape_cast %198 : vector<32xf32> to vector<1x32xf32>
    %220 = vector.broadcast %219 : vector<1x32xf32> to vector<8x32xf32>
    %221 = arith.mulf %218, %220 : vector<8x32xf32>
    %222 = vector.shape_cast %200 : vector<32xf32> to vector<1x32xf32>
    %223 = vector.broadcast %222 : vector<1x32xf32> to vector<8x32xf32>
    %224 = arith.addf %221, %223 : vector<8x32xf32>
    %c0_77 = arith.constant 0 : index
    %c0_78 = arith.constant 0 : index
    %225 = vector.load %arg16[%c0_77, %c0_78] : memref<8x32xf32, #tpu.memory_space<vmem>>, vector<8x32xf32>
    tpu.vector_store %arg16[%c0_77, %c0_78], %224 {strides = array<i32>} : memref<8x32xf32, #tpu.memory_space<vmem>>, vector<8x32xf32>,
    return
  }
  func.func @transform_0(%arg0: i32) -> (i32, i32) {
    %c0_i32 = arith.constant 0 : i32
    %c0_i32_0 = arith.constant 0 : i32
    return %arg0, %c0_i32 : i32, i32
  }
  func.func @transform_1(%arg0: i32) -> (i32, i32) {
    %c0_i32 = arith.constant 0 : i32
    %c0_i32_0 = arith.constant 0 : i32
    %c0_i32_1 = arith.constant 0 : i32
    return %c0_i32, %c0_i32_0 : i32, i32
  }
  func.func @transform_2(%arg0: i32) -> (i32, i32) {
    %c0_i32 = arith.constant 0 : i32
    %c0_i32_0 = arith.constant 0 : i32
    %c0_i32_1 = arith.constant 0 : i32
    return %c0_i32, %c0_i32_0 : i32, i32
  }
  func.func @transform_3(%arg0: i32) -> (i32, i32) {
    %c0_i32 = arith.constant 0 : i32
    %c0_i32_0 = arith.constant 0 : i32
    %c0_i32_1 = arith.constant 0 : i32
    return %c0_i32, %c0_i32_0 : i32, i32
  }
  func.func @transform_4(%arg0: i32) -> (i32, i32) {
    %c0_i32 = arith.constant 0 : i32
    %c0_i32_0 = arith.constant 0 : i32
    %c0_i32_1 = arith.constant 0 : i32
    return %c0_i32, %c0_i32_0 : i32, i32
  }
  func.func @transform_5(%arg0: i32) -> (i32, i32) {
    %c0_i32 = arith.constant 0 : i32
    %c0_i32_0 = arith.constant 0 : i32
    %c0_i32_1 = arith.constant 0 : i32
    return %c0_i32, %c0_i32_0 : i32, i32
  }
  func.func @transform_6(%arg0: i32) -> (i32, i32) {
    %c0_i32 = arith.constant 0 : i32
    %c0_i32_0 = arith.constant 0 : i32
    %c0_i32_1 = arith.constant 0 : i32
    return %c0_i32, %c0_i32_0 : i32, i32
  }
  func.func @transform_7(%arg0: i32) -> (i32, i32) {
    %c0_i32 = arith.constant 0 : i32
    %c0_i32_0 = arith.constant 0 : i32
    %c0_i32_1 = arith.constant 0 : i32
    return %c0_i32, %c0_i32_0 : i32, i32
  }
  func.func @transform_8(%arg0: i32) -> (i32, i32) {
    %c0_i32 = arith.constant 0 : i32
    %c0_i32_0 = arith.constant 0 : i32
    %c0_i32_1 = arith.constant 0 : i32
    return %c0_i32, %c0_i32_0 : i32, i32
  }
  func.func @transform_9(%arg0: i32) -> (i32, i32) {
    %c0_i32 = arith.constant 0 : i32
    %c0_i32_0 = arith.constant 0 : i32
    %c0_i32_1 = arith.constant 0 : i32
    return %c0_i32, %c0_i32_0 : i32, i32
  }
  func.func @transform_10(%arg0: i32) -> (i32, i32) {
    %c0_i32 = arith.constant 0 : i32
    %c0_i32_0 = arith.constant 0 : i32
    %c0_i32_1 = arith.constant 0 : i32
    return %c0_i32, %c0_i32_0 : i32, i32
  }
  func.func @transform_11(%arg0: i32) -> (i32, i32) {
    %c0_i32 = arith.constant 0 : i32
    %c0_i32_0 = arith.constant 0 : i32
    %c0_i32_1 = arith.constant 0 : i32
    return %c0_i32, %c0_i32_0 : i32, i32
  }
  func.func @transform_12(%arg0: i32) -> (i32, i32) {
    %c0_i32 = arith.constant 0 : i32
    %c0_i32_0 = arith.constant 0 : i32
    %c0_i32_1 = arith.constant 0 : i32
    return %c0_i32, %c0_i32_0 : i32, i32
  }
  func.func @transform_13(%arg0: i32) -> (i32, i32) {
    %c0_i32 = arith.constant 0 : i32
    %c0_i32_0 = arith.constant 0 : i32
    %c0_i32_1 = arith.constant 0 : i32
    return %c0_i32, %c0_i32_0 : i32, i32
  }
  func.func @transform_14(%arg0: i32) -> (i32, i32) {
    %c0_i32 = arith.constant 0 : i32
    %c0_i32_0 = arith.constant 0 : i32
    %c0_i32_1 = arith.constant 0 : i32
    return %c0_i32, %c0_i32_0 : i32, i32
  }
  func.func @transform_15(%arg0: i32) -> (i32, i32) {
    %c0_i32 = arith.constant 0 : i32
    %c0_i32_0 = arith.constant 0 : i32
    return %arg0, %c0_i32 : i32, i32
  }
}

</mosaic_0001>

<bundles_post_ra>
// kernel: clip_forward.3
= control target key start
LH: loop header
LB: loop body
LE: loop exit
PB: predicated region body
PF: predicated region fallthrough
CT: control target
= control target key end

     0   :  { %s2158_s0 = inlined_call_operand.vmem [shape: bf16[16,32], index: 0, kind: input, shape index: {}]   ;;  %s2159_s1 = inlined_call_operand.vmem [shape: f32[1,32], index: 1, kind: input, shape index: {}]   ;;  %s2160_s2 = inlined_call_operand.vmem [shape: f32[1,32], index: 2, kind: input, shape index: {}]   ;;  %s2161_s3 = inlined_call_operand.vmem [shape: bf16[32,96], index: 3, kind: input, shape index: {}]   ;;  %s2162_s4 = inlined_call_operand.vmem [shape: f32[1,96], index: 4, kind: input, shape index: {}]   ;;  %s2163_s5 = inlined_call_operand.vmem [shape: bf16[32,32], index: 5, kind: input, shape index: {}]   ;;  %s2164_s6 = inlined_call_operand.vmem [shape: f32[1,32], index: 6, kind: input, shape index: {}]   ;;  %s2165_s7 = inlined_call_operand.vmem [shape: f32[1,32], index: 7, kind: input, shape index: {}]   ;;  %s2166_s8 = inlined_call_operand.vmem [shape: f32[1,32], index: 8, kind: input, shape index: {}]   ;;  %s2167_s9 = inlined_call_operand.vmem [shape: bf16[32,128], index: 9, kind: input, shape index: {}]   ;;  %s2168_s10 = inlined_call_operand.vmem [shape: f32[1,128], index: 10, kind: input, shape index: {}]   ;;  %s2169_s11 = inlined_call_operand.vmem [shape: bf16[128,32], index: 11, kind: input, shape index: {}]   ;;  %s2170_s12 = inlined_call_operand.vmem [shape: f32[1,32], index: 12, kind: input, shape index: {}]   ;;  %s2171_s13 = inlined_call_operand.vmem [shape: f32[1,32], index: 13, kind: input, shape index: {}]   ;;  %s2172_s14 = inlined_call_operand.vmem [shape: f32[1,32], index: 14, kind: input, shape index: {}]   ;;  %s2173_s15 = inlined_call_operand.hbm [shape: f32[16,32], index: 15, kind: output, shape index: {}]  }
   0x1   :  { %2174 = sst [smem:[#allocation6_spill]] %s2158_s0 }
   0x2   :  { %2175 = sst [smem:[#allocation7_spill]] %s2159_s1 }
   0x3   :  { %2176 = sst [smem:[#allocation8_spill]] %s2160_s2 }
   0x4   :  { %2177 = sst [smem:[#allocation9_spill]] %s2161_s3 }
   0x5   :  { %2178 = sst [smem:[#allocation10_spill]] %s2162_s4 }
   0x6   :  { %2179 = sst [smem:[#allocation11_spill]] %s2163_s5 }
   0x7   :  { %20 = vsyncpa [#allocation4], 0 }
   0x8   :  { %22 = vsyncpa [#allocation4 + $0x1], 0  ;;  %s1881_s18 = smov 0   ;;  %s1883_s19 = smov 0  }
   0x9   :  { %s1885_s20 = smov 0   ;;  %s1887_s21 = smov 0  }
   0xa LB: > { %s1902_s22 = sadd.s32 4294967295, %s1782_s21   ;;  %s1453_s23 = sadd.s32 4294967294, %s1782_s21   ;;  %s1782_s21 = sphi %s1887_s21, %s2191_s21   ;;  %s1778_s20 = sphi %s1885_s20, %s2190_s20   ;;  %s1774_s19 = sphi %s1883_s19, %s2189_s19   ;;  %s1770_s18 = sphi %s1881_s18, %s2188_s18  }
   0xb   : > { %s1906_s24 = sadd.s32 1, %s1782_s21   ;;  %s355_s25 = sadd.s32 1, %s1778_s20 }
   0xc   : > { %s352_s26 = ssub.s32 %s1782_s21, %s1906_s24  ;;  %p365_p0 = scmp.ne.s32.totalorder %s1778_s20, %s1774_s19 }
   0xd   : > { %p353_p1 = scmp.eq.s32.totalorder %s352_s26, 0  ;;  %p366_p2 = scmp.eq.s32.totalorder %s1902_s22, 1 }
   0xe   : > { %p371_p3 = scmp.ne.s32.totalorder %s1774_s19, %s1770_s18  ;;  %p372_p4 = scmp.eq.s32.totalorder %s1453_s23, 1 }
   0xf   : > { %s1917_s27 = scalar_select %p353_p1, %s1778_s20, %s355_s25  }
  0x10   : > { %p1919_p5 = por %p366_p2, %p365_p0  ;;  %p1923_p6 = por %p372_p4, %p371_p3 }
  0x11   : > { %p1456_p7 = scmp.ge.s32.totalorder %s1782_s21, 1  ;;  %p439_p8 = scmp.lt.s32.totalorder %s1782_s21, 3 }
  0x13   : > { %p440_p9 = pnand %p1456_p7, %p439_p8 }
  0x14   : > { %p486_p10 = scmp.lt.s32.totalorder (!%p440_p9), %s1902_s22, 1  ;;  %vm495_vm0 = vcmask (!%p440_p9), 261120   ;;  %s2182_s0 = sld [smem:[#allocation6_spill]] (!%p440_p9)  ;;  %v1784_v9 = vmov (!%p440_p9), 0.0   ;;  %vm1785_vm1 = vmmov (!%p440_p9), 0   ;;  %vm602_vm2 = vcmask (!%p440_p9), 64512  }
  0x15   : > { %443 = sbr.rel (%p440_p9) target bundleno = 2936 (0xb78), region = 80  ;;  %s2183_s3 = sld [smem:[#allocation9_spill]] (!%p440_p9)  ;;  %1533 = vmatprep.subr.bf16.mxu0 (!%p440_p9), %v1784_v9  ;;  %1537 = vmatprep.mubr.msk.bf16.mxu0 (!%p440_p9), %vm1785_vm1, %v1784_v9  ;;  %v592_v41 = vlaneseq (!%p440_p9)  ;;  %vm667_vm4 = vcmask (!%p440_p9), 1043456   ;;  %vm828_vm5 = vcmask (!%p440_p9), 130112   ;;  %vm945_vm6 = vcmask (!%p440_p9), 195712  }
  0x16   : > { %1553 = vmatprep.subr.bf16.mxu1 (!%p440_p9), %v1784_v9  ;;  %1555 = vmatprep.mubr.msk.bf16.mxu1 (!%p440_p9), %vm1785_vm1, %v1784_v9  ;;  %s2184_s1 = sld [smem:[#allocation7_spill]] (!%p440_p9)  ;;  %s2185_s2 = sld [smem:[#allocation8_spill]] (!%p440_p9)  ;;  %vm1062_vm7 = vcmask (!%p440_p9), 261312  }
  0x17   : > { %s2186_s4 = sld [smem:[#allocation10_spill]] (!%p440_p9)  ;;  %s1786_s23 = smov (!%p440_p9), 96   ;;  %v593_v42 = vshrl.u32 (!%p440_p9), %v592_v41, 7  ;;  %v595_v43 = vand.u32 (!%p440_p9), 127, %v592_v41 }
  0x18   : > { %s1788_s26 = smov (!%p440_p9), 88   ;;  %s1791_s17 = smov (!%p440_p9), 72  }
  0x19   : > { %vm596_vm3 = vcmp.gt.s32.totalorder (!%p440_p9), %v595_v43, %v593_v42  ;;  %s2187_s5 = sld [smem:[#allocation11_spill]] (!%p440_p9) }
  0x1b   : > { %v1680_v8 = vld [vmem:[%s2183_s3] sm:$0xff] (!%p440_p9)   ;;  %v1681_v10 = vld [vmem:[%s2183_s3 + $0x8] sm:$0xff] (!%p440_p9)  }
  0x1c   : > { %s487_s30 = scalar_select %p486_p10, %s1902_s22, 1  ;;  %1534 = vmatpush3.bf16.msra.mxu0 %v1680_v8  ;;  %v1459_v15 = vld [vmem:[%s2184_s1] ss:$0 sm:$0xff] }
  0x1d   : > { %1535 = vmatprep.subr.bf16.mxu0 %v1784_v9  ;;  %v1460_v17 = vld [vmem:[%s2185_s2] ss:$0 sm:$0xff]  ;;  %s483_s1 = sand.u32 1, %s1774_s19  }
  0x1e   : > { %s1458_s16 = sshll.u32 %s487_s30, 2  ;;  %v1461_v21 = vld [vmem:[%s2186_s4] ss:$0 sm:$0xff]  ;;  %s1789_s30 = smov 80  }
  0x1f   : > { %s489_s25 = scalar_lea.vmem %s2182_s0, %s1458_s16  ;;  %s1790_s16 = smov 112  }
  0x20   : > { %v491_v0 = vld [vmem:[%s489_s25] sm:$0xf]  ;;  %1536 = vmatpush3.bf16.msra.mxu0 %v1681_v10  ;;  %s1787_s25 = smov 120   ;;  %s1792_s0 = smov 104  }
  0x21   : > { %v1934_v1 = vunpack.c.l.bf16 %v491_v0  ;;  %1541 = vmatprep.subr.bf16.mxu0 %v1784_v9 }
  0x23   : > { %v496_v2 = vsel %vm495_vm0, %v1934_v1, 0.0 }
  0x24   : > { %497 = vadd.xlane.f32.xlu0 %v496_v2 }
  0xb1   : > { %v498_v3 = vpop.xlane.xlu0 %497 }
  0xb2   : > { %v500_v4 = vmul.f32 0.03125, %v498_v3 }
  0xb4   : > { %v501_v5 = vsub.f32 %v1934_v1, %v500_v4 }
  0xb6   : > { %v502_v6 = vmul.f32 %v501_v5, %v501_v5 }
  0xb8   : > { %v503_v7 = vsel %vm495_vm0, %v502_v6, 0.0 }
  0xb9   : > { %504 = vadd.xlane.f32.xlu0 %v503_v7 }
 0x146   : > { %v505_v11 = vpop.xlane.xlu0 %504 }
 0x147   : > { %v506_v12 = vmul.f32 0.03125, %v505_v11 }
 0x149   : > { %v507_v13 = vadd.f32 1e-05, %v506_v12 }
 0x14b   : > { %1694 = vrsqrt.f32 %v507_v13 }
 0x155   : > { %v1695_v14 = vpop.eup %1694 }
 0x156   : > { %v509_v16 = vmul.f32 %v1695_v14, %v501_v5 }
 0x158   : > { %v516_v18 = vmul.f32 %v1459_v15, %v509_v16 }
 0x15a   : > { %v523_v19 = vadd.f32 %v1460_v17, %v516_v18 }
 0x15c   : > { %v524_v20 = vpack.c.bf16 %v523_v19, %v523_v19 }
 0x15e   : > { %1538 = vmatmul.mubr.msk.bf16.vlgmr.msra.gmra.mrb[0].mxu0 %vm495_vm0, %v524_v20 }
 0x15f   : > { %1543 = vmatprep.mubr.msk.bf16.mxu0 %vm1785_vm1, %v1784_v9 }
 0x231   : > { %v585_v22 = vpop.f32.mrb[0].mxu0 }
 0x232   : > { %v586_v23 = vadd.f32 %v1461_v21, %v585_v22  ;;  %v1539_v24 = vpop.f32.mrb[1].mxu0 }
 0x233   : > { %v588_v25 = vpop.f32.mrb[2].mxu0 }
 0x234   : > { %v591_v26 = vmul.f32 0.35355338, %v586_v23  ;;  %v1966_v27 = vpack.c.bf16 %v586_v23, %v586_v23  ;;  %v1540_v28 = vpop.f32.mrb[3].mxu0 }
 0x236   : > { %v597_v29 = vpack.c.bf16 %v591_v26, %v591_v26  ;;  %600 = vrot.lane.b32.xlu1 %v1966_v27, %s1786_s23  ;;  %s1794_s23 = smov 56  }
 0x238   : > { %713 = vrot.lane.b32.xlu0 %v597_v29, %s1787_s25  ;;  %s1795_s25 = smov 48  }
 0x23a   : > { %715 = vrot.lane.b32.xlu1 %v1966_v27, %s1788_s26  ;;  %s1796_s26 = smov 40  }
 0x23e   : > { %832 = vrot.lane.b32.xlu1 %v1966_v27, %s1789_s30  ;;  %s1797_s30 = smov 8  }
 0x242   : > { %830 = vrot.lane.b32.xlu1 %v597_v29, %s1790_s16  ;;  %s1457_s16 = sshll.u32 %s483_s1, 3 }
 0x246   : > { %949 = vrot.lane.b32.xlu1 %v1966_v27, %s1791_s17  ;;  %s1381_s17 = scalar_lea.sflag [#allocation4], %s483_s1 }
 0x24a   : > { %947 = vrot.lane.b32.xlu1 %v597_v29, %s1792_s0  ;;  %s1793_s0 = smov 64  }
 0x2a8   : > { %v601_v30 = vpop.permute.xlu1 %600 }
 0x2a9   : > { %v607_v31 = vsel %vm602_vm2, %v601_v30, 0 }
 0x2aa   : > { %1542 = vmatpush3.bf16.xpose.msra.mxu0 %v607_v31  ;;  %v714_v35 = vpop.permute.xlu0 %713 }
 0x2ab   : > { %1547 = vmatprep.subr.bf16.mxu0 %v1784_v9 }
 0x2ac   : > { %v716_v32 = vpop.permute.xlu1 %715 }
 0x2ad   : > { %v721_v33 = vsel %vm602_vm2, %v716_v32, 0 }
 0x2ae   : > { %1554 = vmatpush3.bf16.xpose.msra.mxu1 %v721_v33 }
 0x2af   : > { %1565 = vmatprep.subr.bf16.mxu1 %v1784_v9 }
 0x2b0   : > { %v833_v34 = vpop.permute.xlu1 %832 }
 0x2b1   : > { %1544 = vmatmul.mubr.msk.bf16.vlgmr.msra.gmra.mrb[4].mxu0 %vm602_vm2, %v597_v29  ;;  %v838_v37 = vsel %vm602_vm2, %v833_v34, 0 }
 0x2b2   : > { %1549 = vmatprep.mubr.msk.bf16.mxu0 %vm1785_vm1, %v1784_v9 }
 0x2b4   : > { %v831_v36 = vpop.permute.xlu1 %830 }
 0x2b5   : > { %1556 = vmatmul.mubr.msk.bf16.vlgmr.msra.gmra.mrb[0].mxu1 %vm602_vm2, %v714_v35 }
 0x2b6   : > { %1566 = vmatpush3.bf16.xpose.msra.mxu1 %v838_v37  ;;  %1567 = vmatprep.mubr.msk.bf16.mxu1 %vm1785_vm1, %v1784_v9 }
 0x2b7   : > { %1577 = vmatprep.subr.bf16.mxu1 %v1784_v9 }
 0x2b8   : > { %v950_v38 = vpop.permute.xlu1 %949 }
 0x2b9   : > { %v955_v39 = vsel %vm602_vm2, %v950_v38, 0 }
 0x2bc   : > { %v948_v40 = vpop.permute.xlu1 %947 }
 0x2bd   : > { %1568 = vmatmul.mubr.msk.bf16.vlgmr.msra.gmra.mrb[4].mxu1 %vm602_vm2, %v831_v36 }
 0x2be   : > { %1578 = vmatpush3.bf16.xpose.msra.mxu1 %v955_v39  ;;  %1579 = vmatprep.mubr.msk.bf16.mxu1 %vm1785_vm1, %v1784_v9 }
 0x2bf   : > { %1589 = vmatprep.subr.bf16.mxu1 %v1784_v9 }
 0x2c5   : > { %1580 = vmatmul.mubr.msk.bf16.vlgmr.msra.gmra.mrb[8].mxu1 %vm602_vm2, %v948_v40 }
 0x2c6   : > { %1593 = vmatprep.mubr.msk.bf16.mxu1 %vm1785_vm1, %v1784_v9 }
 0x384   : > { %v643_v44 = vpop.f32.mrb[4].mxu0 }
 0x385   : > { %v649_v45 = vsel %vm596_vm3, -1e+30, %v643_v44  ;;  %v1545_v46 = vpop.f32.mrb[5].mxu0 }
 0x386   : > { %v646_v47 = vpop.f32.mrb[6].mxu0  ;;  %v650_v48 = vsel %vm602_vm2, %v649_v45, -inf }
 0x387   : > { %651 = vmax.xlane.f32.xlu1 %v650_v48  ;;  %v1546_v49 = vpop.f32.mrb[7].mxu0 }
 0x388   : > { %v757_v50 = vpop.f32.mrb[0].mxu1 }
 0x389   : > { %v763_v51 = vsel %vm596_vm3, -1e+30, %v757_v50  ;;  %v1557_v52 = vpop.f32.mrb[1].mxu1 }
 0x38a   : > { %v760_v53 = vpop.f32.mrb[2].mxu1  ;;  %v764_v54 = vsel %vm602_vm2, %v763_v51, -inf }
 0x38b   : > { %765 = vmax.xlane.f32.xlu0 %v764_v54  ;;  %v1558_v55 = vpop.f32.mrb[3].mxu1 }
 0x390   : > { %v874_v56 = vpop.f32.mrb[4].mxu1 }
 0x391   : > { %v880_v57 = vsel %vm596_vm3, -1e+30, %v874_v56  ;;  %v1569_v58 = vpop.f32.mrb[5].mxu1 }
 0x392   : > { %v877_v59 = vpop.f32.mrb[6].mxu1  ;;  %v881_v60 = vsel %vm602_vm2, %v880_v57, -inf  ;;  %v1682_v58 = vld [vmem:[%s2187_s5] sm:$0xff]  }
 0x393   : > { %v1570_v61 = vpop.f32.mrb[7].mxu1  ;;  %882 = vmax.xlane.f32.xlu1 %v881_v60  ;;  %1590 = vmatpush3.bf16.msra.mxu1 %v1682_v58  ;;  %v1683_v59 = vld [vmem:[%s2187_s5 + $0x8] sm:$0xff]  }
 0x394   : > { %1591 = vmatprep.subr.bf16.mxu1 %v1784_v9 }
 0x397   : > { %1592 = vmatpush3.bf16.msra.mxu1 %v1683_v59 }
 0x398   : > { %v991_v62 = vpop.f32.mrb[8].mxu1  ;;  %1605 = vmatprep.subr.bf16.mxu1 %v1784_v9 }
 0x399   : > { %v997_v63 = vsel %vm596_vm3, -1e+30, %v991_v62  ;;  %v1581_v0 = vpop.f32.mrb[9].mxu1 }
 0x39a   : > { %v994_v2 = vpop.f32.mrb[10].mxu1  ;;  %v998_v3 = vsel %vm602_vm2, %v997_v63, -inf }
 0x39b   : > { %999 = vmax.xlane.f32.xlu0 %v998_v3  ;;  %v1582_v4 = vpop.f32.mrb[11].mxu1 }
 0x414   : > { %v652_v5 = vpop.xlane.xlu1 %651 }
 0x415   : > { %v653_v6 = vsub.f32 %v649_v45, %v652_v5 }
 0x417   : > { %v654_v7 = vmul.f32 1.442695, %v653_v6 }
 0x418   : > { %v766_v8 = vpop.xlane.xlu0 %765 }
 0x419   : > { %1696 = vpow2.f32 %v654_v7  ;;  %v767_v10 = vsub.f32 %v763_v51, %v766_v8 }
 0x41b   : > { %v768_v11 = vmul.f32 1.442695, %v767_v10 }
 0x41d   : > { %1698 = vpow2.f32 %v768_v11  ;;  %v1473_v11 = vld [vmem:[%s2164_s6] ss:$0 sm:$0xff] }
 0x420   : > { %v883_v21 = vpop.xlane.xlu1 %882 }
 0x421   : > { %v884_v22 = vsub.f32 %v880_v57, %v883_v21 }
 0x423   : > { %v1697_v12 = vpop.eup %1696  ;;  %v885_v23 = vmul.f32 1.442695, %v884_v22 }
 0x424   : > { %v656_v13 = vsel %vm602_vm2, %v1697_v12, 0.0 }
 0x425   : > { %657 = vadd.xlane.f32.xlu1 %v656_v13 }
 0x427   : > { %v1699_v14 = vpop.eup %1698 }
 0x428   : > { %v1000_v15 = vpop.xlane.xlu0 %999  ;;  %v770_v16 = vsel %vm602_vm2, %v1699_v14, 0.0 }
 0x429   : > { %v1001_v17 = vsub.f32 %v997_v63, %v1000_v15  ;;  %771 = vadd.xlane.f32.xlu0 %v770_v16 }
 0x42b   : > { %v1002_v18 = vmul.f32 1.442695, %v1001_v17 }
 0x42d   : > { %1700 = vpow2.f32 %v1002_v18 }
 0x42e   : > { %1702 = vpow2.f32 %v885_v23 }
 0x436   : > { %662 = vrot.lane.b32.xlu1 %v1966_v27, %s1793_s0 }
 0x437   : > { %v1701_v19 = vpop.eup %1700 }
 0x438   : > { %v1004_v20 = vsel %vm602_vm2, %v1701_v19, 0.0  ;;  %v1703_v24 = vpop.eup %1702 }
 0x439   : > { %1005 = vadd.xlane.f32.xlu0 %v1004_v20  ;;  %v887_v25 = vsel %vm602_vm2, %v1703_v24, 0.0 }
 0x44f   : > { %776 = vrot.lane.b32.xlu0 %v1966_v27, %s1794_s23 }
 0x45a   : > { %888 = vadd.xlane.f32.xlu1 %v887_v25 }
 0x46b   : > { %893 = vrot.lane.b32.xlu1 %v1966_v27, %s1795_s25  ;;  %s1798_s25 = smov 16  }
 0x46f   : > { %1010 = vrot.lane.b32.xlu1 %v1966_v27, %s1796_s26  ;;  %s1799_s26 = smov 24  }
 0x4b2   : > { %v658_v26 = vpop.xlane.xlu1 %657 }
 0x4b3   : > { %1704 = vrcp.f32 %v658_v26 }
 0x4b6   : > { %v663_v28 = vpop.permute.xlu1 %662  ;;  %v772_v30 = vpop.xlane.xlu0 %771 }
 0x4b7   : > { %v669_v29 = vsel %vm667_vm4, %v663_v28, 0  ;;  %1706 = vrcp.f32 %v772_v30  ;;  %v1477_v30 = vld [vmem:[%s2165_s7] ss:$0 sm:$0xff] }
 0x4b8   : > { %1548 = vmatpush3.bf16.msra.mxu0 %v669_v29 }
 0x4b9   : > { %1559 = vmatprep.subr.bf16.mxu0 %v1784_v9 }
 0x4bd   : > { %v1705_v31 = vpop.eup %1704 }
 0x4be   : > { %v660_v32 = vmul.f32 %v1705_v31, %v1697_v12 }
 0x4c0   : > { %v661_v33 = vpack.c.bf16 %v660_v32, %v660_v32  ;;  %v1478_v32 = vld [vmem:[%s2166_s8] ss:$0 sm:$0xff] }
 0x4c1   : > { %v1707_v27 = vpop.eup %1706 }
 0x4c2   : > { %1550 = vmatmul.mubr.msk.bf16.vlgmr.msra.gmra.mrb[8].mxu0 %vm602_vm2, %v661_v33  ;;  %v774_v35 = vmul.f32 %v1707_v27, %v1699_v14 }
 0x4c3   : > { %1561 = vmatprep.mubr.msk.bf16.mxu0 %vm1785_vm1, %v1784_v9 }
 0x4c4   : > { %v775_v38 = vpack.c.bf16 %v774_v35, %v774_v35  ;;  %v1686_v35 = vld [vmem:[%s2169_s11] sm:$0xff]  }
 0x4c6   : > { %v1006_v34 = vpop.xlane.xlu0 %1005 }
 0x4ca   : > { %v777_v36 = vpop.permute.xlu0 %776 }
 0x4cb   : > { %v782_v37 = vsel %vm667_vm4, %v777_v36, 0  ;;  %v1687_v36 = vld [vmem:[%s2169_s11 + $0x8] sm:$0xff]  }
 0x4cc   : > { %1560 = vmatpush3.bf16.msra.mxu0 %v782_v37  ;;  %v1688_v37 = vld [vmem:[%s2169_s11 + $0x10] sm:$0xff]  }
 0x4cd   : > { %1571 = vmatprep.subr.bf16.mxu0 %v1784_v9 }
 0x4cf   : > { %1562 = vmatmul.mubr.msk.bf16.vlgmr.msra.gmra.mrb[12].mxu0 %vm602_vm2, %v775_v38  ;;  %v1689_v38 = vld [vmem:[%s2169_s11 + $0x18] sm:$0xff]  }
 0x4d0   : > { %1573 = vmatprep.mubr.msk.bf16.mxu0 %vm1785_vm1, %v1784_v9 }
 0x4e7   : > { %v889_v39 = vpop.xlane.xlu1 %888 }
 0x4e8   : > { %1708 = vrcp.f32 %v889_v39  ;;  %v1690_v39 = vld [vmem:[%s2169_s11 + $0x20] sm:$0xff]  }
 0x4e9   : > { %1710 = vrcp.f32 %v1006_v34 }
 0x4eb   : > { %v894_v40 = vpop.permute.xlu1 %893 }
 0x4ec   : > { %v899_v41 = vsel %vm667_vm4, %v894_v40, 0  ;;  %v1691_v40 = vld [vmem:[%s2169_s11 + $0x28] sm:$0xff]  }
 0x4ed   : > { %1572 = vmatpush3.bf16.msra.mxu0 %v899_v41  ;;  %v1692_v41 = vld [vmem:[%s2169_s11 + $0x30] sm:$0xff]  }
 0x4ee   : > { %1583 = vmatprep.subr.bf16.mxu0 %v1784_v9 }
 0x4ef   : > { %v1011_v44 = vpop.permute.xlu1 %1010 }
 0x4f0   : > { %v1016_v47 = vsel %vm667_vm4, %v1011_v44, 0 }
 0x4f2   : > { %v1709_v42 = vpop.eup %1708 }
 0x4f3   : > { %v891_v43 = vmul.f32 %v1709_v42, %v1703_v24  ;;  %v1711_v46 = vpop.eup %1710  ;;  %v1684_v24 = vld [vmem:[%s2167_s9] sm:$0xff]   ;;  %v1693_v42 = vld [vmem:[%s2169_s11 + $0x38] sm:$0xff]  }
 0x4f4   : > { %v1008_v48 = vmul.f32 %v1711_v46, %v1701_v19 }
 0x4f5   : > { %v892_v45 = vpack.c.bf16 %v891_v43, %v891_v43  ;;  %v1479_v43 = vld [vmem:[%s2168_s10] ss:$0 sm:$0xff] }
 0x4f6   : > { %v1009_v49 = vpack.c.bf16 %v1008_v48, %v1008_v48 }
 0x4f7   : > { %1574 = vmatmul.mubr.msk.bf16.vlgmr.msra.gmra.mrb[16].mxu0 %vm602_vm2, %v892_v45 }
 0x4f8   : > { %1584 = vmatpush3.bf16.msra.mxu0 %v1016_v47  ;;  %1585 = vmatprep.mubr.msk.bf16.mxu0 %vm1785_vm1, %v1784_v9 }
 0x4f9   : > { %1597 = vmatprep.subr.bf16.mxu0 %v1784_v9 }
 0x4ff   : > { %1586 = vmatmul.mubr.msk.bf16.vlgmr.msra.gmra.mrb[20].mxu0 %vm602_vm2, %v1009_v49 }
 0x500   : > { %1601 = vmatprep.mubr.msk.bf16.mxu0 %vm1785_vm1, %v1784_v9  ;;  %1598 = vmatpush3.bf16.msra.mxu0 %v1684_v24 }
 0x501   : > { %1599 = vmatprep.subr.bf16.mxu0 %v1784_v9 }
 0x595   : > { %v705_v50 = vpop.f32.mrb[8].mxu0 }
 0x596   : > { %711 = vst.msk [vmem:[#allocation2] sm:$0xff] %vm602_vm2, %v705_v50  ;;  %v1551_v51 = vpop.f32.mrb[9].mxu0 }
 0x597   : > { %v708_v52 = vpop.f32.mrb[10].mxu0 }
 0x598   : > { %v1552_v53 = vpop.f32.mrb[11].mxu0 }
 0x5a2   : > { %v818_v54 = vpop.f32.mrb[12].mxu0 }
 0x5a3   : > { %825 = vrot.lane.b32.xlu0 %v818_v54, %s1797_s30  ;;  %v1563_v55 = vpop.f32.mrb[13].mxu0  ;;  %s485_s30 = scalar_lea.vmem [#allocation3], %s1457_s16 }
 0x5a4   : > { %v821_v56 = vpop.f32.mrb[14].mxu0  ;;  %v1484_v55 = vld [vmem:[%s2170_s12] ss:$0 sm:$0xff]  ;;  %s1394_s2 = sshll.u32 %s485_s30, 4  ;;  %s2117_s2 = int_to_ptr.vmem [resolvable:$true] %s1394_s2 }
 0x5a5   : > { %v1564_v57 = vpop.f32.mrb[15].mxu0  ;;  %s1720_s0 = scalar_lea.vmem %s2117_s2, 128 }
 0x5a6   : > { %p1721_p11 = scmp.ne.s32.totalorder %s2117_s2, %s1720_s0 }
 0x5a8   : > { %p1722_p12 = pnand %p1721_p11, %p1919_p5 }
 0x5aa   : > { %p1723_p13 = pneg %p1722_p12 }
 0x5ca   : > { %v935_v60 = vpop.f32.mrb[16].mxu0 }
 0x5cb   : > { %942 = vrot.lane.b32.xlu1 %v935_v60, %s1798_s25  ;;  %v1575_v61 = vpop.f32.mrb[17].mxu0 }
 0x5cc   : > { %v938_v62 = vpop.f32.mrb[18].mxu0 }
 0x5cd   : > { %v1576_v63 = vpop.f32.mrb[19].mxu0 }
 0x5d2   : > { %v1052_v0 = vpop.f32.mrb[20].mxu0 }
 0x5d3   : > { %1059 = vrot.lane.b32.xlu0 %v1052_v0, %s1799_s26  ;;  %v1587_v2 = vpop.f32.mrb[21].mxu0  ;;  %s1496_s26 = sshll.u32 %s1902_s22, 7  ;;  %s1800_s22 = smov [#allocation3]  }
 0x5d4   : > { %v1055_v3 = vpop.f32.mrb[22].mxu0  ;;  %s2115_s5 = scalar_lea.hbm %s2173_s15, %s1496_s26  ;;  %s1724_s16 = sshll.u32 %s1800_s22, 4  ;;  %s1725_s16 = int_to_ptr.vmem [resolvable:$false] %s1724_s16 }
 0x5d5   : > { %v1588_v4 = vpop.f32.mrb[23].mxu0  ;;  %s1726_s23 = scalar_lea.vmem %s1725_s16, 256  ;;  %p1727_p0 = scmp.lt.s32.totalorder %s2117_s2, %s1725_s16 }
 0x5d6   : > { %p1728_p1 = scmp.lt.s32.totalorder %s1726_s23, %s1720_s0 }
 0x5d8   : > { %p1729_p2 = por %p1728_p1, %p1727_p0 }
 0x5da   : > { %p1730_p3 = pnand %p1729_p2, %p1723_p13 }
 0x615   : > { %v826_v5 = vpop.permute.xlu0 %825 }
 0x616   : > { %829 = vst.msk [vmem:[#allocation2] sm:$0xff] %vm828_vm5, %v826_v5 }
 0x63d   : > { %v943_v6 = vpop.permute.xlu1 %942 }
 0x63e   : > { %946 = vst.msk [vmem:[#allocation2] sm:$0xff] %vm945_vm6, %v943_v6 }
 0x645   : > { %v1060_v7 = vpop.permute.xlu0 %1059 }
 0x646   : > { %1063 = vst.msk [vmem:[#allocation2] sm:$0xff] %vm1062_vm7, %v1060_v7 }
 0x64d   : > { %v1064_v8 = vld [vmem:[#allocation2] sm:$0xff] }
 0x64e   : > { %v1065_v10 = vpack.c.bf16 %v1064_v8, %v1064_v8 }
 0x650   : > { %1594 = vmatmul.mubr.msk.bf16.vlgmr.msra.gmra.mrb[12].mxu1 %vm495_vm0, %v1065_v10  ;;  %v1493_v10 = vld [vmem:[%s2171_s13] ss:$0 sm:$0xff] }
 0x651   : > { %1621 = vmatprep.mubr.msk.bf16.mxu1 %vm1785_vm1, %v1784_v9  ;;  %1606 = vmatpush3.bf16.msra.mxu1 %v1686_v35 }
 0x652   : > { %1607 = vmatprep.subr.bf16.mxu1 %v1784_v9 }
 0x655   : > { %1608 = vmatpush3.bf16.msra.mxu1 %v1687_v36 }
 0x656   : > { %1609 = vmatprep.subr.bf16.mxu1 %v1784_v9 }
 0x659   : > { %1610 = vmatpush3.bf16.msra.mxu1 %v1688_v37 }
 0x65a   : > { %1611 = vmatprep.subr.bf16.mxu1 %v1784_v9 }
 0x65d   : > { %1612 = vmatpush3.bf16.msra.mxu1 %v1689_v38 }
 0x65e   : > { %1613 = vmatprep.subr.bf16.mxu1 %v1784_v9 }
 0x661   : > { %1614 = vmatpush3.bf16.msra.mxu1 %v1690_v39 }
 0x662   : > { %1615 = vmatprep.subr.bf16.mxu1 %v1784_v9 }
 0x665   : > { %1616 = vmatpush3.bf16.msra.mxu1 %v1691_v40 }
 0x666   : > { %1617 = vmatprep.subr.bf16.mxu1 %v1784_v9 }
 0x669   : > { %1618 = vmatpush3.bf16.msra.mxu1 %v1692_v41 }
 0x66a   : > { %1619 = vmatprep.subr.bf16.mxu1 %v1784_v9 }
 0x66d   : > { %1620 = vmatpush3.bf16.msra.mxu1 %v1693_v42 }
 0x723   : > { %v1126_v12 = vpop.f32.mrb[12].mxu1 }
 0x724   : > { %v1127_v13 = vadd.f32 %v1473_v11, %v1126_v12  ;;  %v1595_v14 = vpop.f32.mrb[13].mxu1  ;;  %v1494_v12 = vld [vmem:[%s2172_s14] ss:$0 sm:$0xff] }
 0x725   : > { %v1129_v15 = vpop.f32.mrb[14].mxu1 }
 0x726   : > { %v2044_v16 = vadd.f32 %v1127_v13, %v1934_v1  ;;  %v1596_v17 = vpop.f32.mrb[15].mxu1  ;;  %v1685_v1 = vld [vmem:[%s2167_s9 + $0x8] sm:$0xff]  }
 0x727   : > { %1600 = vmatpush3.bf16.msra.mxu0 %v1685_v1 }
 0x728   : > { %v1135_v18 = vsel %vm495_vm0, %v2044_v16, 0.0 }
 0x729   : > { %1136 = vadd.xlane.f32.xlu1 %v1135_v18 }
 0x7b6   : > { %v1137_v19 = vpop.xlane.xlu1 %1136 }
 0x7b7   : > { %v1138_v20 = vmul.f32 0.03125, %v1137_v19 }
 0x7b9   : > { %v1139_v21 = vsub.f32 %v2044_v16, %v1138_v20 }
 0x7bb   : > { %v1140_v22 = vmul.f32 %v1139_v21, %v1139_v21 }
 0x7bd   : > { %v1141_v23 = vsel %vm495_vm0, %v1140_v22, 0.0 }
 0x7be   : > { %1142 = vadd.xlane.f32.xlu0 %v1141_v23 }
 0x84b   : > { %v1143_v25 = vpop.xlane.xlu0 %1142 }
 0x84c   : > { %v1144_v26 = vmul.f32 0.03125, %v1143_v25 }
 0x84e   : > { %v1145_v28 = vadd.f32 1e-05, %v1144_v26 }
 0x850   : > { %1712 = vrsqrt.f32 %v1145_v28 }
 0x85a   : > { %v1713_v29 = vpop.eup %1712 }
 0x85b   : > { %v1147_v31 = vmul.f32 %v1713_v29, %v1139_v21 }
 0x85d   : > { %v1154_v33 = vmul.f32 %v1477_v30, %v1147_v31 }
 0x85f   : > { %v1161_v27 = vadd.f32 %v1478_v32, %v1154_v33 }
 0x861   : > { %v1162_v34 = vpack.c.bf16 %v1161_v27, %v1161_v27 }
 0x863   : > { %1602 = vmatmul.mubr.msk.bf16.vlgmr.msra.gmra.mrb[24].mxu0 %vm495_vm0, %v1162_v34 }
 0x936   : > { %v1223_v44 = vpop.f32.mrb[24].mxu0 }
 0x937   : > { %v1224_v45 = vadd.f32 %v1479_v43, %v1223_v44  ;;  %v1603_v46 = vpop.f32.mrb[25].mxu0 }
 0x938   : > { %v1226_v47 = vpop.f32.mrb[26].mxu0 }
 0x939   : > { %v1483_v48 = vmul.f32 -1.702, %v1224_v45  ;;  %v1604_v49 = vpop.f32.mrb[27].mxu0 }
 0x93b   : > { %v1231_v50 = vmul.f32 1.442695, %v1483_v48 }
 0x93d   : > { %1714 = vpow2.f32 %v1231_v50 }
 0x947   : > { %v1715_v51 = vpop.eup %1714 }
 0x948   : > { %v1233_v52 = vadd.f32 1.0, %v1715_v51 }
 0x94a   : > { %1716 = vrcp.f32 %v1233_v52 }
 0x954   : > { %v1717_v9 = vpop.eup %1716 }
 0x955   : > { %v1236_v53 = vmul.f32 %v1717_v9, %v1224_v45 }
 0x957   : > { %v1237_v54 = vpack.c.bf16 %v1236_v53, %v1236_v53 }
 0x959   : > { %1622 = vmatmul.mubr.bf16.vlgmr.msra.gmra.mrb[16].mxu1 %v1237_v54 }
 0xa2c   : > { %v1343_v56 = vpop.f32.mrb[16].mxu1 }
 0xa2d   : > { %v1344_v57 = vadd.f32 %v1484_v55, %v1343_v56  ;;  %v1623_v58 = vpop.f32.mrb[17].mxu1 }
 0xa2e   : > { %v1346_v59 = vpop.f32.mrb[18].mxu1 }
 0xa2f   : > { %v1624_v60 = vpop.f32.mrb[19].mxu1  ;;  %v1349_v61 = vadd.f32 %v1344_v57, %v2044_v16 }
 0xa31   : > { %v1352_v62 = vsel %vm495_vm0, %v1349_v61, 0.0 }
 0xa32   : > { %1353 = vadd.xlane.f32.xlu0 %v1352_v62 }
 0xabf   : > { %v1354_v63 = vpop.xlane.xlu0 %1353 }
 0xac0   : > { %v1355_v0 = vmul.f32 0.03125, %v1354_v63 }
 0xac2   : > { %v1356_v2 = vsub.f32 %v1349_v61, %v1355_v0 }
 0xac4   : > { %v1357_v3 = vmul.f32 %v1356_v2, %v1356_v2 }
 0xac6   : > { %v1358_v4 = vsel %vm495_vm0, %v1357_v3, 0.0 }
 0xac7   : > { %1359 = vadd.xlane.f32.xlu1 %v1358_v4 }
 0xb54   : > { %v1360_v5 = vpop.xlane.xlu1 %1359 }
 0xb55   : > { %v1361_v6 = vmul.f32 0.03125, %v1360_v5 }
 0xb57   : > { %v1362_v7 = vadd.f32 1e-05, %v1361_v6 }
 0xb59   : > { %1718 = vrsqrt.f32 %v1362_v7 }
 0xb63   : > { %v1719_v8 = vpop.eup %1718 }
 0xb64   : > { %v1364_v11 = vmul.f32 %v1719_v8, %v1356_v2 }
 0xb66   : > { %v1371_v13 = vmul.f32 %v1493_v10, %v1364_v11 }
 0xb68   : > { %v1378_v14 = vadd.f32 %v1494_v12, %v1371_v13 }
 0xb6a   : > { %1379 = vst.msk [vmem:[%s485_s30] sm:$0xff] %vm495_vm0, %v1378_v14 }
 0xb6b   : > { %1733 = shalt.err (!%p1730_p3)
}
 0xb6c   : > { %s1734_s3 = scalar_lea.hbm %s2115_s5, 128  ;;  %s1738_s25 = scalar_lea.hbm %s2173_s15, 256 }
 0xb6d   : > { %p1735_p4 = scmp.ne.s32.totalorder %s2115_s5, %s1734_s3  ;;  %p1739_p9 = scmp.lt.u32.totalorder %s2115_s5, %s2173_s15 }
 0xb6e   : > { %p1740_p10 = scmp.lt.u32.totalorder %s1738_s25, %s1734_s3  ;;  %p1742_p12 = scmp.lt.u32.totalorder %s1734_s3, %s2115_s5 }
 0xb6f   : > { %p1736_p7 = pnand %p1735_p4, %p1919_p5 }
 0xb70   : > { %p1741_p11 = por %p1740_p10, %p1739_p9 }
 0xb71   : > { %p1737_p8 = pneg %p1736_p7 }
 0xb72   : > { %p1743_p13 = por %p1742_p12, %p1741_p11 }
 0xb74   : > { %p1744_p0 = pnand %p1743_p13, %p1737_p8 }
 0xb76   : > { %1747 = shalt.err (!%p1744_p0)
}
 0xb77   : > { %1625 = dma.vmem_to_hbm [thread:$0]  (%p1919_p5), %s2117_s2, 128, %s2115_s5, %s1381_s17  }
 0xb78 PF: > { %p1631_p1 = scmp.ge.s32.totalorder %s1782_s21, 2  ;;  %s1406_s0 = sand.u32 1, %s1770_s18  }
 0xb79   : > { %s1407_s22 = scalar_lea.sflag [#allocation4], %s1406_s0 }
 0xb7a   : > { %p1628_p2 = pnand %p1631_p1, %p1923_p6 }
 0xb7c   : > { %1765 = dma.done.wait (!%p1628_p2), %s1407_s22, 128  }
 0xb7d   : > { %1767 = vsyncadd (!%p1628_p2), %s1407_s22, 4294967168  ;;  %p25_p3 = scmp.ge.s32.totalorder %s1906_s24, 4   ;;  %s2188_s18 = smov %s1774_s19 }
 0xb7e   : > { %s2189_s19 = smov %s1778_s20  ;;  %s2190_s20 = smov %s1917_s27 }
 0xb7f   : > { %s2191_s21 = smov %s1906_s24  ;;  %27 = sbr.rel (!%p25_p3) target bundleno = 10 (0xa), region = 115 }
 0xb86   :  { %1412 = vsyncpa [#allocation4], 1 }
 0xb87   :  { %1414 = vsyncpa [#allocation4 + $0x1], 1 }

// kernel: clip_forward.2
= control target key start
LH: loop header
LB: loop body
LE: loop exit
PB: predicated region body
PF: predicated region fallthrough
CT: control target
= control target key end

     0   :  { %s1677_s25 = smov 0   ;;  %s1869_s0 = inlined_call_operand.vmem [shape: bf16[16,32], index: 0, kind: input, shape index: {}]   ;;  %s1870_s1 = inlined_call_operand.vmem [shape: f32[1,32], index: 1, kind: input, shape index: {}]   ;;  %s1871_s2 = inlined_call_operand.vmem [shape: f32[1,32], index: 2, kind: input, shape index: {}]   ;;  %s1872_s3 = inlined_call_operand.vmem [shape: bf16[32,96], index: 3, kind: input, shape index: {}]   ;;  %s1873_s4 = inlined_call_operand.vmem [shape: f32[1,96], index: 4, kind: input, shape index: {}]   ;;  %s1874_s5 = inlined_call_operand.vmem [shape: bf16[32,32], index: 5, kind: input, shape index: {}]   ;;  %s1875_s6 = inlined_call_operand.vmem [shape: f32[1,32], index: 6, kind: input, shape index: {}]   ;;  %s1876_s7 = inlined_call_operand.vmem [shape: f32[1,32], index: 7, kind: input, shape index: {}]   ;;  %s1877_s8 = inlined_call_operand.vmem [shape: f32[1,32], index: 8, kind: input, shape index: {}]   ;;  %s1878_s9 = inlined_call_operand.vmem [shape: bf16[32,128], index: 9, kind: input, shape index: {}]   ;;  %s1879_s10 = inlined_call_operand.vmem [shape: f32[1,128], index: 10, kind: input, shape index: {}]   ;;  %s1880_s11 = inlined_call_operand.vmem [shape: bf16[128,32], index: 11, kind: input, shape index: {}]   ;;  %s1881_s12 = inlined_call_operand.vmem [shape: f32[1,32], index: 12, kind: input, shape index: {}]   ;;  %s1882_s13 = inlined_call_operand.vmem [shape: bf16[16,32], index: 13, kind: output, shape index: {}]  }
   0x1 LB: > { %s1352_s26 = sadd.s32 4294967295, %s1589_s25   ;;  %p1356_p0 = scmp.ge.s32.totalorder %s1589_s25, 1  ;;  %s1589_s25 = sphi %s1677_s25, %s23_s25  }
   0x2   : > { %p386_p1 = scmp.lt.s32.totalorder %s1589_s25, 3 }
   0x4   : > { %p387_p2 = pnand %p1356_p0, %p386_p1 }
   0x5   : > { %p428_p3 = scmp.lt.s32.totalorder (!%p387_p2), %s1352_s26, 1  ;;  %vm441_vm0 = vcmask (!%p387_p2), 261120   ;;  %v1545_v8 = vld [vmem:[%s1872_s3] sm:$0xff] (!%p387_p2)   ;;  %v1591_v9 = vmov (!%p387_p2), 0.0   ;;  %vm1592_vm1 = vmmov (!%p387_p2), 0   ;;  %v1546_v10 = vld [vmem:[%s1872_s3 + $0x8] sm:$0xff] (!%p387_p2)   ;;  %v538_v41 = vlaneseq (!%p387_p2) }
   0x6   : > { %390 = sbr.rel (%p387_p2) target bundleno = 2596 (0xa24), region = 72  ;;  %1429 = vmatprep.subr.bf16.mxu0 (!%p387_p2), %v1591_v9  ;;  %1433 = vmatprep.mubr.msk.bf16.mxu0 (!%p387_p2), %vm1592_vm1, %v1591_v9  ;;  %v1359_v15 = vld [vmem:[%s1870_s1] ss:$0 sm:$0xff] (!%p387_p2)  ;;  %s1593_s24 = smov (!%p387_p2), 96   ;;  %vm548_vm2 = vcmask (!%p387_p2), 64512   ;;  %vm613_vm4 = vcmask (!%p387_p2), 1043456  }
   0x7   : > { %1430 = vmatpush3.bf16.msra.mxu0 (!%p387_p2), %v1545_v8  ;;  %1449 = vmatprep.subr.bf16.mxu1 (!%p387_p2), %v1591_v9  ;;  %v1360_v17 = vld [vmem:[%s1871_s2] ss:$0 sm:$0xff] (!%p387_p2)  ;;  %s1594_s28 = smov (!%p387_p2), 120   ;;  %s1595_s29 = smov (!%p387_p2), 88   ;;  %v539_v42 = vshrl.u32 (!%p387_p2), %v538_v41, 7  ;;  %v541_v43 = vand.u32 (!%p387_p2), 127, %v538_v41 }
   0x8   : > { %1431 = vmatprep.subr.bf16.mxu0 (!%p387_p2), %v1591_v9  ;;  %1451 = vmatprep.mubr.msk.bf16.mxu1 (!%p387_p2), %vm1592_vm1, %v1591_v9  ;;  %v1361_v21 = vld [vmem:[%s1873_s4] ss:$0 sm:$0xff] (!%p387_p2)  ;;  %s1597_s14 = smov (!%p387_p2), 112   ;;  %s1598_s15 = smov (!%p387_p2), 72   ;;  %vm774_vm5 = vcmask (!%p387_p2), 130112   ;;  %vm891_vm6 = vcmask (!%p387_p2), 195712  }
   0x9   : > { %s1599_s16 = smov (!%p387_p2), 104   ;;  %vm542_vm3 = vcmp.gt.s32.totalorder (!%p387_p2), %v541_v43, %v539_v42  ;;  %s1600_s17 = smov (!%p387_p2), 64   ;;  %vm1008_vm7 = vcmask (!%p387_p2), 261312   ;;  %vm1297_vm8 = vcmask (!%p387_p2), 257024  }
   0xa   : > { %s1601_s18 = smov (!%p387_p2), 56   ;;  %s1602_s19 = smov (!%p387_p2), 48  }
   0xb   : > { %1432 = vmatpush3.bf16.msra.mxu0 (!%p387_p2), %v1546_v10  ;;  %s1603_s20 = smov (!%p387_p2), 40   ;;  %s1604_s21 = smov (!%p387_p2), 8  }
   0xc   : > { %1437 = vmatprep.subr.bf16.mxu0 (!%p387_p2), %v1591_v9 }
   0xd   : > { %s1884_s26 = smov (!%p428_p3, %s1352_s26), 1 }
   0xe   : > { %s1357_s27 = sshll.u32 %s1884_s26, 2 }
   0xf   : > { %s431_s30 = scalar_lea.vmem %s1869_s0, %s1357_s27 }
  0x10   : > { %v437_v0 = vld [vmem:[%s431_s30] sm:$0xf]  ;;  %s1596_s30 = smov 80  }
  0x11   : > { %v1693_v1 = vunpack.c.l.bf16 %v437_v0 }
  0x13   : > { %v442_v2 = vsel %vm441_vm0, %v1693_v1, 0.0 }
  0x14   : > { %443 = vadd.xlane.f32.xlu0 %v442_v2 }
  0xa1   : > { %v444_v3 = vpop.xlane.xlu0 %443 }
  0xa2   : > { %v446_v4 = vmul.f32 0.03125, %v444_v3 }
  0xa4   : > { %v447_v5 = vsub.f32 %v1693_v1, %v446_v4 }
  0xa6   : > { %v448_v6 = vmul.f32 %v447_v5, %v447_v5 }
  0xa8   : > { %v449_v7 = vsel %vm441_vm0, %v448_v6, 0.0 }
  0xa9   : > { %450 = vadd.xlane.f32.xlu0 %v449_v7 }
 0x136   : > { %v451_v11 = vpop.xlane.xlu0 %450 }
 0x137   : > { %v452_v12 = vmul.f32 0.03125, %v451_v11 }
 0x139   : > { %v453_v13 = vadd.f32 1e-05, %v452_v12 }
 0x13b   : > { %1559 = vrsqrt.f32 %v453_v13 }
 0x145   : > { %v1560_v14 = vpop.eup %1559 }
 0x146   : > { %v455_v16 = vmul.f32 %v1560_v14, %v447_v5 }
 0x148   : > { %v462_v18 = vmul.f32 %v1359_v15, %v455_v16 }
 0x14a   : > { %v469_v19 = vadd.f32 %v1360_v17, %v462_v18 }
 0x14c   : > { %v470_v20 = vpack.c.bf16 %v469_v19, %v469_v19 }
 0x14e   : > { %1434 = vmatmul.mubr.msk.bf16.vlgmr.msra.gmra.mrb[0].mxu0 %vm441_vm0, %v470_v20 }
 0x14f   : > { %1439 = vmatprep.mubr.msk.bf16.mxu0 %vm1592_vm1, %v1591_v9 }
 0x221   : > { %v531_v22 = vpop.f32.mrb[0].mxu0 }
 0x222   : > { %v532_v23 = vadd.f32 %v1361_v21, %v531_v22  ;;  %v1435_v24 = vpop.f32.mrb[1].mxu0 }
 0x223   : > { %v534_v25 = vpop.f32.mrb[2].mxu0 }
 0x224   : > { %v537_v26 = vmul.f32 0.35355338, %v532_v23  ;;  %v1725_v27 = vpack.c.bf16 %v532_v23, %v532_v23  ;;  %v1436_v28 = vpop.f32.mrb[3].mxu0 }
 0x226   : > { %v543_v29 = vpack.c.bf16 %v537_v26, %v537_v26  ;;  %546 = vrot.lane.b32.xlu1 %v1725_v27, %s1593_s24 }
 0x228   : > { %659 = vrot.lane.b32.xlu0 %v543_v29, %s1594_s28 }
 0x22a   : > { %661 = vrot.lane.b32.xlu1 %v1725_v27, %s1595_s29  ;;  %s1605_s29 = smov 16  }
 0x22e   : > { %778 = vrot.lane.b32.xlu1 %v1725_v27, %s1596_s30  ;;  %s1606_s30 = smov 24  }
 0x232   : > { %776 = vrot.lane.b32.xlu1 %v543_v29, %s1597_s14 }
 0x236   : > { %895 = vrot.lane.b32.xlu1 %v1725_v27, %s1598_s15 }
 0x23a   : > { %893 = vrot.lane.b32.xlu1 %v543_v29, %s1599_s16 }
 0x298   : > { %v547_v30 = vpop.permute.xlu1 %546 }
 0x299   : > { %v553_v31 = vsel %vm548_vm2, %v547_v30, 0 }
 0x29a   : > { %1438 = vmatpush3.bf16.xpose.msra.mxu0 %v553_v31  ;;  %v660_v35 = vpop.permute.xlu0 %659 }
 0x29b   : > { %1443 = vmatprep.subr.bf16.mxu0 %v1591_v9 }
 0x29c   : > { %v662_v32 = vpop.permute.xlu1 %661 }
 0x29d   : > { %v667_v33 = vsel %vm548_vm2, %v662_v32, 0 }
 0x29e   : > { %1450 = vmatpush3.bf16.xpose.msra.mxu1 %v667_v33 }
 0x29f   : > { %1461 = vmatprep.subr.bf16.mxu1 %v1591_v9 }
 0x2a0   : > { %v779_v34 = vpop.permute.xlu1 %778 }
 0x2a1   : > { %1440 = vmatmul.mubr.msk.bf16.vlgmr.msra.gmra.mrb[4].mxu0 %vm548_vm2, %v543_v29  ;;  %v784_v37 = vsel %vm548_vm2, %v779_v34, 0 }
 0x2a2   : > { %1445 = vmatprep.mubr.msk.bf16.mxu0 %vm1592_vm1, %v1591_v9 }
 0x2a4   : > { %v777_v36 = vpop.permute.xlu1 %776 }
 0x2a5   : > { %1452 = vmatmul.mubr.msk.bf16.vlgmr.msra.gmra.mrb[0].mxu1 %vm548_vm2, %v660_v35 }
 0x2a6   : > { %1462 = vmatpush3.bf16.xpose.msra.mxu1 %v784_v37  ;;  %1463 = vmatprep.mubr.msk.bf16.mxu1 %vm1592_vm1, %v1591_v9 }
 0x2a7   : > { %1473 = vmatprep.subr.bf16.mxu1 %v1591_v9 }
 0x2a8   : > { %v896_v38 = vpop.permute.xlu1 %895 }
 0x2a9   : > { %v901_v39 = vsel %vm548_vm2, %v896_v38, 0 }
 0x2ac   : > { %v894_v40 = vpop.permute.xlu1 %893 }
 0x2ad   : > { %1464 = vmatmul.mubr.msk.bf16.vlgmr.msra.gmra.mrb[4].mxu1 %vm548_vm2, %v777_v36 }
 0x2ae   : > { %1474 = vmatpush3.bf16.xpose.msra.mxu1 %v901_v39  ;;  %1475 = vmatprep.mubr.msk.bf16.mxu1 %vm1592_vm1, %v1591_v9 }
 0x2af   : > { %1485 = vmatprep.subr.bf16.mxu1 %v1591_v9 }
 0x2b5   : > { %1476 = vmatmul.mubr.msk.bf16.vlgmr.msra.gmra.mrb[8].mxu1 %vm548_vm2, %v894_v40 }
 0x2b6   : > { %1489 = vmatprep.mubr.msk.bf16.mxu1 %vm1592_vm1, %v1591_v9 }
 0x374   : > { %v589_v44 = vpop.f32.mrb[4].mxu0 }
 0x375   : > { %v595_v45 = vsel %vm542_vm3, -1e+30, %v589_v44  ;;  %v1441_v46 = vpop.f32.mrb[5].mxu0 }
 0x376   : > { %v592_v47 = vpop.f32.mrb[6].mxu0  ;;  %v596_v48 = vsel %vm548_vm2, %v595_v45, -inf }
 0x377   : > { %597 = vmax.xlane.f32.xlu1 %v596_v48  ;;  %v1442_v49 = vpop.f32.mrb[7].mxu0 }
 0x378   : > { %v703_v50 = vpop.f32.mrb[0].mxu1 }
 0x379   : > { %v709_v51 = vsel %vm542_vm3, -1e+30, %v703_v50  ;;  %v1453_v52 = vpop.f32.mrb[1].mxu1 }
 0x37a   : > { %v706_v53 = vpop.f32.mrb[2].mxu1  ;;  %v710_v54 = vsel %vm548_vm2, %v709_v51, -inf }
 0x37b   : > { %711 = vmax.xlane.f32.xlu0 %v710_v54  ;;  %v1454_v55 = vpop.f32.mrb[3].mxu1 }
 0x380   : > { %v820_v56 = vpop.f32.mrb[4].mxu1 }
 0x381   : > { %v826_v57 = vsel %vm542_vm3, -1e+30, %v820_v56  ;;  %v1465_v58 = vpop.f32.mrb[5].mxu1 }
 0x382   : > { %v823_v59 = vpop.f32.mrb[6].mxu1  ;;  %v827_v60 = vsel %vm548_vm2, %v826_v57, -inf  ;;  %v1547_v58 = vld [vmem:[%s1874_s5] sm:$0xff]  }
 0x383   : > { %v1466_v61 = vpop.f32.mrb[7].mxu1  ;;  %828 = vmax.xlane.f32.xlu1 %v827_v60  ;;  %1486 = vmatpush3.bf16.msra.mxu1 %v1547_v58  ;;  %v1548_v59 = vld [vmem:[%s1874_s5 + $0x8] sm:$0xff]  }
 0x384   : > { %1487 = vmatprep.subr.bf16.mxu1 %v1591_v9 }
 0x387   : > { %1488 = vmatpush3.bf16.msra.mxu1 %v1548_v59 }
 0x388   : > { %v937_v62 = vpop.f32.mrb[8].mxu1  ;;  %1501 = vmatprep.subr.bf16.mxu1 %v1591_v9 }
 0x389   : > { %v943_v63 = vsel %vm542_vm3, -1e+30, %v937_v62  ;;  %v1477_v0 = vpop.f32.mrb[9].mxu1 }
 0x38a   : > { %v940_v2 = vpop.f32.mrb[10].mxu1  ;;  %v944_v3 = vsel %vm548_vm2, %v943_v63, -inf }
 0x38b   : > { %945 = vmax.xlane.f32.xlu0 %v944_v3  ;;  %v1478_v4 = vpop.f32.mrb[11].mxu1 }
 0x404   : > { %v598_v5 = vpop.xlane.xlu1 %597 }
 0x405   : > { %v599_v6 = vsub.f32 %v595_v45, %v598_v5 }
 0x407   : > { %v600_v7 = vmul.f32 1.442695, %v599_v6 }
 0x408   : > { %v712_v8 = vpop.xlane.xlu0 %711 }
 0x409   : > { %1561 = vpow2.f32 %v600_v7  ;;  %v713_v10 = vsub.f32 %v709_v51, %v712_v8 }
 0x40b   : > { %v714_v11 = vmul.f32 1.442695, %v713_v10 }
 0x40d   : > { %1563 = vpow2.f32 %v714_v11  ;;  %v1373_v11 = vld [vmem:[%s1875_s6] ss:$0 sm:$0xff] }
 0x410   : > { %v829_v21 = vpop.xlane.xlu1 %828 }
 0x411   : > { %v830_v22 = vsub.f32 %v826_v57, %v829_v21 }
 0x413   : > { %v1562_v12 = vpop.eup %1561  ;;  %v831_v23 = vmul.f32 1.442695, %v830_v22 }
 0x414   : > { %v602_v13 = vsel %vm548_vm2, %v1562_v12, 0.0 }
 0x415   : > { %603 = vadd.xlane.f32.xlu1 %v602_v13 }
 0x417   : > { %v1564_v14 = vpop.eup %1563 }
 0x418   : > { %v946_v15 = vpop.xlane.xlu0 %945  ;;  %v716_v16 = vsel %vm548_vm2, %v1564_v14, 0.0 }
 0x419   : > { %v947_v17 = vsub.f32 %v943_v63, %v946_v15  ;;  %717 = vadd.xlane.f32.xlu0 %v716_v16 }
 0x41b   : > { %v948_v18 = vmul.f32 1.442695, %v947_v17 }
 0x41d   : > { %1565 = vpow2.f32 %v948_v18 }
 0x41e   : > { %1567 = vpow2.f32 %v831_v23 }
 0x426   : > { %608 = vrot.lane.b32.xlu1 %v1725_v27, %s1600_s17 }
 0x427   : > { %v1566_v19 = vpop.eup %1565 }
 0x428   : > { %v950_v20 = vsel %vm548_vm2, %v1566_v19, 0.0  ;;  %v1568_v24 = vpop.eup %1567 }
 0x429   : > { %951 = vadd.xlane.f32.xlu0 %v950_v20  ;;  %v833_v25 = vsel %vm548_vm2, %v1568_v24, 0.0 }
 0x43f   : > { %722 = vrot.lane.b32.xlu0 %v1725_v27, %s1601_s18  ;;  %s435_s18 = scalar_lea.vmem %s1882_s13, %s1357_s27 }
 0x44a   : > { %834 = vadd.xlane.f32.xlu1 %v833_v25 }
 0x45b   : > { %839 = vrot.lane.b32.xlu1 %v1725_v27, %s1602_s19 }
 0x45f   : > { %956 = vrot.lane.b32.xlu1 %v1725_v27, %s1603_s20 }
 0x4a2   : > { %v604_v26 = vpop.xlane.xlu1 %603 }
 0x4a3   : > { %1569 = vrcp.f32 %v604_v26 }
 0x4a6   : > { %v609_v28 = vpop.permute.xlu1 %608  ;;  %v718_v30 = vpop.xlane.xlu0 %717 }
 0x4a7   : > { %v615_v29 = vsel %vm613_vm4, %v609_v28, 0  ;;  %1571 = vrcp.f32 %v718_v30  ;;  %v1377_v30 = vld [vmem:[%s1876_s7] ss:$0 sm:$0xff] }
 0x4a8   : > { %1444 = vmatpush3.bf16.msra.mxu0 %v615_v29 }
 0x4a9   : > { %1455 = vmatprep.subr.bf16.mxu0 %v1591_v9 }
 0x4ad   : > { %v1570_v31 = vpop.eup %1569 }
 0x4ae   : > { %v606_v32 = vmul.f32 %v1570_v31, %v1562_v12 }
 0x4b0   : > { %v607_v33 = vpack.c.bf16 %v606_v32, %v606_v32  ;;  %v1378_v32 = vld [vmem:[%s1877_s8] ss:$0 sm:$0xff] }
 0x4b1   : > { %v1572_v27 = vpop.eup %1571 }
 0x4b2   : > { %1446 = vmatmul.mubr.msk.bf16.vlgmr.msra.gmra.mrb[8].mxu0 %vm548_vm2, %v607_v33  ;;  %v720_v35 = vmul.f32 %v1572_v27, %v1564_v14 }
 0x4b3   : > { %1457 = vmatprep.mubr.msk.bf16.mxu0 %vm1592_vm1, %v1591_v9 }
 0x4b4   : > { %v721_v38 = vpack.c.bf16 %v720_v35, %v720_v35  ;;  %v1551_v35 = vld [vmem:[%s1880_s11] sm:$0xff]  }
 0x4b6   : > { %v952_v34 = vpop.xlane.xlu0 %951 }
 0x4ba   : > { %v723_v36 = vpop.permute.xlu0 %722 }
 0x4bb   : > { %v728_v37 = vsel %vm613_vm4, %v723_v36, 0  ;;  %v1552_v36 = vld [vmem:[%s1880_s11 + $0x8] sm:$0xff]  }
 0x4bc   : > { %1456 = vmatpush3.bf16.msra.mxu0 %v728_v37  ;;  %v1553_v37 = vld [vmem:[%s1880_s11 + $0x10] sm:$0xff]  }
 0x4bd   : > { %1467 = vmatprep.subr.bf16.mxu0 %v1591_v9 }
 0x4bf   : > { %1458 = vmatmul.mubr.msk.bf16.vlgmr.msra.gmra.mrb[12].mxu0 %vm548_vm2, %v721_v38  ;;  %v1554_v38 = vld [vmem:[%s1880_s11 + $0x18] sm:$0xff]  }
 0x4c0   : > { %1469 = vmatprep.mubr.msk.bf16.mxu0 %vm1592_vm1, %v1591_v9 }
 0x4d7   : > { %v835_v39 = vpop.xlane.xlu1 %834 }
 0x4d8   : > { %1573 = vrcp.f32 %v835_v39  ;;  %v1555_v39 = vld [vmem:[%s1880_s11 + $0x20] sm:$0xff]  }
 0x4d9   : > { %1575 = vrcp.f32 %v952_v34 }
 0x4db   : > { %v840_v40 = vpop.permute.xlu1 %839 }
 0x4dc   : > { %v845_v41 = vsel %vm613_vm4, %v840_v40, 0  ;;  %v1556_v40 = vld [vmem:[%s1880_s11 + $0x28] sm:$0xff]  }
 0x4dd   : > { %1468 = vmatpush3.bf16.msra.mxu0 %v845_v41  ;;  %v1557_v41 = vld [vmem:[%s1880_s11 + $0x30] sm:$0xff]  }
 0x4de   : > { %1479 = vmatprep.subr.bf16.mxu0 %v1591_v9 }
 0x4df   : > { %v957_v44 = vpop.permute.xlu1 %956 }
 0x4e0   : > { %v962_v47 = vsel %vm613_vm4, %v957_v44, 0 }
 0x4e2   : > { %v1574_v42 = vpop.eup %1573 }
 0x4e3   : > { %v837_v43 = vmul.f32 %v1574_v42, %v1568_v24  ;;  %v1576_v46 = vpop.eup %1575  ;;  %v1549_v24 = vld [vmem:[%s1878_s9] sm:$0xff]   ;;  %v1558_v42 = vld [vmem:[%s1880_s11 + $0x38] sm:$0xff]  }
 0x4e4   : > { %v954_v48 = vmul.f32 %v1576_v46, %v1566_v19 }
 0x4e5   : > { %v838_v45 = vpack.c.bf16 %v837_v43, %v837_v43  ;;  %v1379_v43 = vld [vmem:[%s1879_s10] ss:$0 sm:$0xff] }
 0x4e6   : > { %v955_v49 = vpack.c.bf16 %v954_v48, %v954_v48 }
 0x4e7   : > { %1470 = vmatmul.mubr.msk.bf16.vlgmr.msra.gmra.mrb[16].mxu0 %vm548_vm2, %v838_v45 }
 0x4e8   : > { %1480 = vmatpush3.bf16.msra.mxu0 %v962_v47  ;;  %1481 = vmatprep.mubr.msk.bf16.mxu0 %vm1592_vm1, %v1591_v9 }
 0x4e9   : > { %1493 = vmatprep.subr.bf16.mxu0 %v1591_v9 }
 0x4ef   : > { %1482 = vmatmul.mubr.msk.bf16.vlgmr.msra.gmra.mrb[20].mxu0 %vm548_vm2, %v955_v49 }
 0x4f0   : > { %1497 = vmatprep.mubr.msk.bf16.mxu0 %vm1592_vm1, %v1591_v9  ;;  %1494 = vmatpush3.bf16.msra.mxu0 %v1549_v24 }
 0x4f1   : > { %1495 = vmatprep.subr.bf16.mxu0 %v1591_v9 }
 0x585   : > { %v651_v50 = vpop.f32.mrb[8].mxu0 }
 0x586   : > { %657 = vst.msk [vmem:[#allocation2] sm:$0xff] %vm548_vm2, %v651_v50  ;;  %v1447_v51 = vpop.f32.mrb[9].mxu0 }
 0x587   : > { %v654_v52 = vpop.f32.mrb[10].mxu0 }
 0x588   : > { %v1448_v53 = vpop.f32.mrb[11].mxu0 }
 0x592   : > { %v764_v54 = vpop.f32.mrb[12].mxu0 }
 0x593   : > { %771 = vrot.lane.b32.xlu0 %v764_v54, %s1604_s21  ;;  %v1459_v55 = vpop.f32.mrb[13].mxu0 }
 0x594   : > { %v767_v56 = vpop.f32.mrb[14].mxu0  ;;  %v1384_v55 = vld [vmem:[%s1881_s12] ss:$0 sm:$0xff] }
 0x595   : > { %v1460_v57 = vpop.f32.mrb[15].mxu0 }
 0x5ba   : > { %v881_v60 = vpop.f32.mrb[16].mxu0 }
 0x5bb   : > { %888 = vrot.lane.b32.xlu1 %v881_v60, %s1605_s29  ;;  %v1471_v61 = vpop.f32.mrb[17].mxu0 }
 0x5bc   : > { %v884_v62 = vpop.f32.mrb[18].mxu0 }
 0x5bd   : > { %v1472_v63 = vpop.f32.mrb[19].mxu0 }
 0x5c2   : > { %v998_v0 = vpop.f32.mrb[20].mxu0 }
 0x5c3   : > { %1005 = vrot.lane.b32.xlu0 %v998_v0, %s1606_s30  ;;  %v1483_v2 = vpop.f32.mrb[21].mxu0 }
 0x5c4   : > { %v1001_v3 = vpop.f32.mrb[22].mxu0 }
 0x5c5   : > { %v1484_v4 = vpop.f32.mrb[23].mxu0 }
 0x605   : > { %v772_v5 = vpop.permute.xlu0 %771 }
 0x606   : > { %775 = vst.msk [vmem:[#allocation2] sm:$0xff] %vm774_vm5, %v772_v5 }
 0x62d   : > { %v889_v6 = vpop.permute.xlu1 %888 }
 0x62e   : > { %892 = vst.msk [vmem:[#allocation2] sm:$0xff] %vm891_vm6, %v889_v6 }
 0x635   : > { %v1006_v7 = vpop.permute.xlu0 %1005 }
 0x636   : > { %1009 = vst.msk [vmem:[#allocation2] sm:$0xff] %vm1008_vm7, %v1006_v7 }
 0x63d   : > { %v1010_v8 = vld [vmem:[#allocation2] sm:$0xff] }
 0x63e   : > { %v1011_v10 = vpack.c.bf16 %v1010_v8, %v1010_v8 }
 0x640   : > { %1490 = vmatmul.mubr.msk.bf16.vlgmr.msra.gmra.mrb[12].mxu1 %vm441_vm0, %v1011_v10 }
 0x641   : > { %1517 = vmatprep.mubr.msk.bf16.mxu1 %vm1592_vm1, %v1591_v9  ;;  %1502 = vmatpush3.bf16.msra.mxu1 %v1551_v35 }
 0x642   : > { %1503 = vmatprep.subr.bf16.mxu1 %v1591_v9 }
 0x645   : > { %1504 = vmatpush3.bf16.msra.mxu1 %v1552_v36 }
 0x646   : > { %1505 = vmatprep.subr.bf16.mxu1 %v1591_v9 }
 0x649   : > { %1506 = vmatpush3.bf16.msra.mxu1 %v1553_v37 }
 0x64a   : > { %1507 = vmatprep.subr.bf16.mxu1 %v1591_v9 }
 0x64d   : > { %1508 = vmatpush3.bf16.msra.mxu1 %v1554_v38 }
 0x64e   : > { %1509 = vmatprep.subr.bf16.mxu1 %v1591_v9 }
 0x651   : > { %1510 = vmatpush3.bf16.msra.mxu1 %v1555_v39 }
 0x652   : > { %1511 = vmatprep.subr.bf16.mxu1 %v1591_v9 }
 0x655   : > { %1512 = vmatpush3.bf16.msra.mxu1 %v1556_v40 }
 0x656   : > { %1513 = vmatprep.subr.bf16.mxu1 %v1591_v9 }
 0x659   : > { %1514 = vmatpush3.bf16.msra.mxu1 %v1557_v41 }
 0x65a   : > { %1515 = vmatprep.subr.bf16.mxu1 %v1591_v9 }
 0x65d   : > { %1516 = vmatpush3.bf16.msra.mxu1 %v1558_v42 }
 0x713   : > { %v1072_v12 = vpop.f32.mrb[12].mxu1 }
 0x714   : > { %v1073_v13 = vadd.f32 %v1373_v11, %v1072_v12  ;;  %v1491_v14 = vpop.f32.mrb[13].mxu1 }
 0x715   : > { %v1075_v15 = vpop.f32.mrb[14].mxu1 }
 0x716   : > { %v1803_v16 = vadd.f32 %v1073_v13, %v1693_v1  ;;  %v1492_v17 = vpop.f32.mrb[15].mxu1  ;;  %v1550_v1 = vld [vmem:[%s1878_s9 + $0x8] sm:$0xff]  }
 0x717   : > { %1496 = vmatpush3.bf16.msra.mxu0 %v1550_v1 }
 0x718   : > { %v1081_v18 = vsel %vm441_vm0, %v1803_v16, 0.0 }
 0x719   : > { %1082 = vadd.xlane.f32.xlu1 %v1081_v18 }
 0x7a6   : > { %v1083_v19 = vpop.xlane.xlu1 %1082 }
 0x7a7   : > { %v1084_v20 = vmul.f32 0.03125, %v1083_v19 }
 0x7a9   : > { %v1085_v21 = vsub.f32 %v1803_v16, %v1084_v20 }
 0x7ab   : > { %v1086_v22 = vmul.f32 %v1085_v21, %v1085_v21 }
 0x7ad   : > { %v1087_v23 = vsel %vm441_vm0, %v1086_v22, 0.0 }
 0x7ae   : > { %1088 = vadd.xlane.f32.xlu0 %v1087_v23 }
 0x83b   : > { %v1089_v25 = vpop.xlane.xlu0 %1088 }
 0x83c   : > { %v1090_v26 = vmul.f32 0.03125, %v1089_v25 }
 0x83e   : > { %v1091_v28 = vadd.f32 1e-05, %v1090_v26 }
 0x840   : > { %1577 = vrsqrt.f32 %v1091_v28 }
 0x84a   : > { %v1578_v29 = vpop.eup %1577 }
 0x84b   : > { %v1093_v31 = vmul.f32 %v1578_v29, %v1085_v21 }
 0x84d   : > { %v1100_v33 = vmul.f32 %v1377_v30, %v1093_v31 }
 0x84f   : > { %v1107_v27 = vadd.f32 %v1378_v32, %v1100_v33 }
 0x851   : > { %v1108_v34 = vpack.c.bf16 %v1107_v27, %v1107_v27 }
 0x853   : > { %1498 = vmatmul.mubr.msk.bf16.vlgmr.msra.gmra.mrb[24].mxu0 %vm441_vm0, %v1108_v34 }
 0x926   : > { %v1169_v44 = vpop.f32.mrb[24].mxu0 }
 0x927   : > { %v1170_v45 = vadd.f32 %v1379_v43, %v1169_v44  ;;  %v1499_v46 = vpop.f32.mrb[25].mxu0 }
 0x928   : > { %v1172_v47 = vpop.f32.mrb[26].mxu0 }
 0x929   : > { %v1383_v48 = vmul.f32 -1.702, %v1170_v45  ;;  %v1500_v49 = vpop.f32.mrb[27].mxu0 }
 0x92b   : > { %v1177_v50 = vmul.f32 1.442695, %v1383_v48 }
 0x92d   : > { %1579 = vpow2.f32 %v1177_v50 }
 0x937   : > { %v1580_v51 = vpop.eup %1579 }
 0x938   : > { %v1179_v9 = vadd.f32 1.0, %v1580_v51 }
 0x93a   : > { %1581 = vrcp.f32 %v1179_v9 }
 0x944   : > { %v1582_v52 = vpop.eup %1581 }
 0x945   : > { %v1182_v53 = vmul.f32 %v1582_v52, %v1170_v45 }
 0x947   : > { %v1183_v54 = vpack.c.bf16 %v1182_v53, %v1182_v53 }
 0x949   : > { %1518 = vmatmul.mubr.bf16.vlgmr.msra.gmra.mrb[16].mxu1 %v1183_v54 }
 0xa1c   : > { %v1289_v56 = vpop.f32.mrb[16].mxu1 }
 0xa1d   : > { %v1290_v57 = vadd.f32 %v1384_v55, %v1289_v56  ;;  %v1519_v58 = vpop.f32.mrb[17].mxu1 }
 0xa1e   : > { %v1292_v59 = vpop.f32.mrb[18].mxu1 }
 0xa1f   : > { %v1295_v60 = vadd.f32 %v1290_v57, %v1803_v16  ;;  %v1520_v61 = vpop.f32.mrb[19].mxu1 }
 0xa21   : > { %v1296_v62 = vpack.c.bf16 %v1295_v60, %v1295_v60 }
 0xa23   : > { %1298 = vst.msk [vmem:[%s435_s18] sm:$0xf] %vm1297_vm8, %v1296_v62 }
 0xa24 PF: > { %s23_s25 = sadd.s32 1, %s1589_s25  }
 0xa25   : > { %p20_p4 = scmp.ge.s32.totalorder %s23_s25, 4  }
 0xa27   :  { %22 = sbr.rel (!%p20_p4) target bundleno = 1 (0x1), region = 102 }

</bundles_post_ra>
